<compile_context>
chip_gen: v7x
topology: tpu7x:2x2x1
jax: 0.10.0
libtpu: 0.0.40
codegen_flags: <defaults>
</compile_context>

<pallas_src>
import math
from functools import partial

import jax
import jax.numpy as jnp
from jax import lax
from jax.experimental import pallas as pl
from jax.experimental.pallas import tpu as pltpu

LN_EPS = 1e-12
F32 = jnp.float32


# --------------------------------------------------------------------------
# in-kernel helpers (operate on values, not refs)
# --------------------------------------------------------------------------
def _ln(y, g, b):
    mu = jnp.mean(y, axis=-1, keepdims=True)
    var = jnp.mean((y - mu) ** 2, axis=-1, keepdims=True)
    return (y - mu) * lax.rsqrt(var + LN_EPS) * g + b


def _gelu(x):
    c = math.sqrt(2.0 / math.pi)
    return 0.5 * x * (1.0 + jnp.tanh(c * (x + 0.044715 * x * x * x)))


# --------------------------------------------------------------------------
# single fused Pallas kernel
# --------------------------------------------------------------------------
def fused_forward_kernel(cate_ref, cont_ref, mask_ref,
                         cate_w_ref, cont_w_ref, front_vec_ref,
                         pos_ref, emb_vec_ref,
                         wqkv_ref, wmats_ref, bqkv_ref, lvec_ref,
                         reg_w1_ref, reg_w2_ref, reg_vec_ref,
                         o_ref, *, B, S, nh, dh, L):
    H = nh * dh

    # ---- categorical / continuous projections + LayerNorm ----------------
    fv = front_vec_ref[...]                       # [8, H//2] packed vectors
    cate_h = _ln(jnp.dot(cate_ref[...], cate_w_ref[...],
                         preferred_element_type=F32) + fv[0:1],
                 fv[1:2], fv[2:3])
    cont_h = _ln(jnp.dot(cont_ref[...], cont_w_ref[...],
                         preferred_element_type=F32) + fv[3:4],
                 fv[4:5], fv[5:6])
    seq_emb = jnp.concatenate([cate_h, cont_h], axis=-1)          # [B*S, H]

    # ---- BertEmbeddings: + position emb + token_type(0) emb, LayerNorm ---
    ev = emb_vec_ref[...]                          # [4, H]: tok0, ln_g, ln_b
    pos_tiled = jnp.concatenate([pos_ref[...]] * B, axis=0)       # [B*S, H]
    x = seq_emb + pos_tiled + ev[0:1]
    x = _ln(x, ev[1:2], ev[2:3])

    # ---- encoder (post-LN BERT layers) ------------------------------------
    mask_bias = (1.0 - mask_ref[...]) * (-10000.0)                # [B, S]
    scale = 1.0 / math.sqrt(dh)

    for l in range(L):                              # static unroll (L small)
        vec = lvec_ref[l]                           # [8, H] biases / LN params
        qkv = (jnp.dot(x, wqkv_ref[l], preferred_element_type=F32)
               + bqkv_ref[l])                       # [B*S, 3H]
        qkv3 = qkv.reshape(B, S, 3 * H)

        ctx_heads = []
        for h in range(nh):                         # static unroll (nh small)
            qh = qkv3[:, :, h * dh:(h + 1) * dh]                  # [B, S, dh]
            kh = qkv3[:, :, H + h * dh:H + (h + 1) * dh]
            vh = qkv3[:, :, 2 * H + h * dh:2 * H + (h + 1) * dh]
            s = jnp.einsum('bqd,bkd->bqk', qh, kh,
                           preferred_element_type=F32) * scale    # [B, S, S]
            s = s + mask_bias[:, None, :]
            p = jnp.exp(s - jnp.max(s, axis=-1, keepdims=True))
            p = p * pl.reciprocal(jnp.sum(p, axis=-1, keepdims=True),
                                  approx=True)
            ctx_heads.append(jnp.einsum('bqk,bkd->bqd', p, vh,
                                        preferred_element_type=F32))
        ctx = jnp.concatenate(ctx_heads, axis=-1).reshape(B * S, H)

        attn = jnp.dot(ctx, wmats_ref[l, 0],
                       preferred_element_type=F32) + vec[0:1]
        h1 = _ln(attn + x, vec[1:2], vec[2:3])                    # post-attn LN
        inter = _gelu(jnp.dot(h1, wmats_ref[l, 1],
                              preferred_element_type=F32) + vec[3:4])
        ffn = jnp.dot(inter, wmats_ref[l, 2],
                      preferred_element_type=F32) + vec[4:5]
        x = _ln(ffn + h1, vec[5:6], vec[6:7])                     # post-FFN LN

    # ---- sequence_output[:, -1] via one-hot row selection (MXU-friendly) --
    col = lax.broadcasted_iota(jnp.int32, (B, B * S), 1)
    row = lax.broadcasted_iota(jnp.int32, (B, B * S), 0)
    sel = (col == row * S + (S - 1)).astype(F32)                  # [B, B*S]
    last = jnp.dot(sel, x, preferred_element_type=F32)            # [B, H]

    # ---- regression head: Linear -> LayerNorm -> (Dropout=id) -> ReLU -> Linear
    rv = reg_vec_ref[...]                                         # [4, H]
    y = jnp.dot(last, reg_w1_ref[...], preferred_element_type=F32) + rv[0:1]
    y = jnp.maximum(_ln(y, rv[1:2], rv[2:3]), 0.0)
    o_ref[...] = (jnp.dot(y, reg_w2_ref[...], preferred_element_type=F32)
                  + rv[3:4, 0:1])


# --------------------------------------------------------------------------
# config + deterministic parameter init (packed layout)
# --------------------------------------------------------------------------
class Cfg:
    cate_cols = ["c0", "c1"]          # 2 categorical columns
    cont_cols = ["f0", "f1", "f2"]    # 3 continuous columns
    total_cate_size = 20
    emb_size = 8
    hidden_size = 32
    nlayers = 2
    nheads = 4
    seq_len = 8
    dropout = 0.0
    target_size = 1


def init_params(key, cfg):
    C, N = len(cfg.cate_cols), len(cfg.cont_cols)
    H, E, S = cfg.hidden_size, cfg.emb_size, cfg.seq_len
    Hh, L, T = H // 2, cfg.nlayers, cfg.target_size

    def nxt():
        nonlocal key
        key, sub = jax.random.split(key)
        return sub

    def w(shape):
        return (0.02 * jax.random.normal(nxt(), shape)).astype(F32)

    zHh, oHh = jnp.zeros((Hh,), F32), jnp.ones((Hh,), F32)
    zH, oH = jnp.zeros((H,), F32), jnp.ones((H,), F32)

    p = {}
    cate_emb = w((cfg.total_cate_size, E))
    p["cate_emb"] = cate_emb.at[0].set(0.0)                      # padding_idx=0

    p["cate_w"] = w((E * C, Hh))
    p["cont_w"] = w((N, Hh))
    # rows: cate_b, cate_gamma, cate_beta, cont_b, cont_gamma, cont_beta, pad, pad
    p["front_vec"] = jnp.stack([zHh, oHh, zHh, zHh, oHh, zHh, zHh, zHh])

    p["pos_emb"] = w((S, H))
    tok0 = w((2, H))[0]                                           # token_type 0
    # rows: tok_type0_emb, emb_ln_gamma, emb_ln_beta, pad
    p["emb_vec"] = jnp.stack([tok0, oH, zH, zH])

    wqkv, wmats, bqkv, lvec = [], [], [], []
    for _ in range(L):
        Wq, Wk, Wv, Wo, Wi, Wf = (w((H, H)) for _ in range(6))
        wqkv.append(jnp.concatenate([Wq, Wk, Wv], axis=1))        # [H, 3H]
        wmats.append(jnp.stack([Wo, Wi, Wf]))                     # [3, H, H]
        bqkv.append(jnp.zeros((1, 3 * H), F32))
        # rows: bo, ln1_g, ln1_b, bi, bf, ln2_g, ln2_b, pad
        lvec.append(jnp.stack([zH, oH, zH, zH, zH, oH, zH, zH]))
    p["w_qkv"] = jnp.stack(wqkv)        # [L, H, 3H]
    p["w_mats"] = jnp.stack(wmats)      # [L, 3, H, H]
    p["b_qkv"] = jnp.stack(bqkv)        # [L, 1, 3H]
    p["layer_vec"] = jnp.stack(lvec)    # [L, 8, H]

    p["reg_w1"] = w((H, H))
    p["reg_w2"] = w((H, T))
    # rows: reg_b1, reg_ln_gamma, reg_ln_beta, [reg_b2 in element 0 | pad]
    p["reg_vec"] = jnp.stack([zH, oH, zH, zH])
    return p


# --------------------------------------------------------------------------
# forward pass: embedding gather in JAX glue, everything else in ONE kernel
# --------------------------------------------------------------------------
def forward(params, cate_x, cont_x, mask, cfg):
    B = cate_x.shape[0]
    S, H = cfg.seq_len, cfg.hidden_size
    C, E, N = len(cfg.cate_cols), cfg.emb_size, len(cfg.cont_cols)
    nh, dh, L = cfg.nheads, cfg.hidden_size // cfg.nheads, cfg.nlayers

    cate_flat = params["cate_emb"][cate_x.reshape(-1)].reshape(B * S, C * E)
    cont_flat = cont_x.reshape(B * S, N).astype(F32)
    mask_f = mask.astype(F32)

    kernel = partial(fused_forward_kernel, B=B, S=S, nh=nh, dh=dh, L=L)
    return pl.pallas_call(
        kernel,
        out_shape=jax.ShapeDtypeStruct((B, cfg.target_size), F32),
        in_specs=[pl.BlockSpec(memory_space=pltpu.MemorySpace.VMEM)] * 15,
        out_specs=pl.BlockSpec(memory_space=pltpu.MemorySpace.VMEM),
    )(cate_flat, cont_flat, mask_f,
      params["cate_w"], params["cont_w"], params["front_vec"],
      params["pos_emb"], params["emb_vec"],
      params["w_qkv"], params["w_mats"], params["b_qkv"], params["layer_vec"],
      params["reg_w1"], params["reg_w2"], params["reg_vec"])


# --------------------------------------------------------------------------
# main
# --------------------------------------------------------------------------
if __name__ == "__main__":
    cfg = Cfg()
    key = jax.random.PRNGKey(0)
    k_par, k_cate, k_cont = jax.random.split(key, 3)

    params = init_params(k_par, cfg)

    B = 2
    cate_x = jax.random.randint(
        k_cate, (B, cfg.seq_len, len(cfg.cate_cols)), 0, cfg.total_cate_size,
        dtype=jnp.int32)
    cont_x = jax.random.normal(
        k_cont, (B, cfg.seq_len, len(cfg.cont_cols)), dtype=F32)
    mask = jnp.ones((B, cfg.seq_len), F32).at[0, :2].set(0.0)   # some padding

    fwd = jax.jit(lambda p, a, c, m: forward(p, a, c, m, cfg))
    out = fwd(params, cate_x, cont_x, mask)
    jax.block_until_ready(out)
    assert out.shape == (B, cfg.target_size)
    print("KERNEL_OK")
</pallas_src>

<mosaic_0001>
module attributes {stable_mosaic.version = 11 : i64} {
  func.func @fused_forward_kernel(%arg0: memref<16x16xf32, #tpu.memory_space<vmem>>, %arg1: memref<16x3xf32, #tpu.memory_space<vmem>>, %arg2: memref<2x8xf32, #tpu.memory_space<vmem>>, %arg3: memref<16x16xf32, #tpu.memory_space<vmem>>, %arg4: memref<3x16xf32, #tpu.memory_space<vmem>>, %arg5: memref<8x16xf32, #tpu.memory_space<vmem>>, %arg6: memref<8x32xf32, #tpu.memory_space<vmem>>, %arg7: memref<4x32xf32, #tpu.memory_space<vmem>>, %arg8: memref<2x32x96xf32, #tpu.memory_space<vmem>>, %arg9: memref<2x3x32x32xf32, #tpu.memory_space<vmem>>, %arg10: memref<2x1x96xf32, #tpu.memory_space<vmem>>, %arg11: memref<2x8x32xf32, #tpu.memory_space<vmem>>, %arg12: memref<32x32xf32, #tpu.memory_space<vmem>>, %arg13: memref<32x1xf32, #tpu.memory_space<vmem>>, %arg14: memref<4x32xf32, #tpu.memory_space<vmem>>, %arg15: memref<2x1xf32, #tpu.memory_space<vmem>>) attributes {dimension_semantics = [], scalar_prefetch = 0 : i64, scratch_operands = 0 : i64, tpu.core_type = #tpu.core_type<tc>} {
    %c0 = arith.constant 0 : index
    %c0_0 = arith.constant 0 : index
    %0 = vector.load %arg5[%c0, %c0_0] : memref<8x16xf32, #tpu.memory_space<vmem>>, vector<8x16xf32>
    %c0_1 = arith.constant 0 : index
    %c0_2 = arith.constant 0 : index
    %1 = vector.load %arg0[%c0_1, %c0_2] : memref<16x16xf32, #tpu.memory_space<vmem>>, vector<16x16xf32>
    %c0_3 = arith.constant 0 : index
    %c0_4 = arith.constant 0 : index
    %2 = vector.load %arg3[%c0_3, %c0_4] : memref<16x16xf32, #tpu.memory_space<vmem>>, vector<16x16xf32>
    %cst = arith.constant dense<0.000000e+00> : vector<16x16xf32>
    %3 = tpu.matmul %1, %2, %cst {dimension_numbers = #tpu.dot_dimension_numbers<[1], [0], [0], [1], [0, 0, 1, 1], [], []>} : vector<16x16xf32>, vector<16x16xf32>, vector<16x16xf32> -> vector<16x16xf32>
    %4 = vector.extract_strided_slice %0 {offsets = [0, 0], sizes = [1, 16], strides = [1, 1]} : vector<8x16xf32> to vector<1x16xf32>
    %5 = vector.broadcast %4 : vector<1x16xf32> to vector<16x16xf32>
    %6 = arith.addf %3, %5 : vector<16x16xf32>
    %7 = vector.extract_strided_slice %0 {offsets = [1, 0], sizes = [1, 16], strides = [1, 1]} : vector<8x16xf32> to vector<1x16xf32>
    %8 = vector.extract_strided_slice %0 {offsets = [2, 0], sizes = [1, 16], strides = [1, 1]} : vector<8x16xf32> to vector<1x16xf32>
    %cst_5 = arith.constant dense<0.000000e+00> : vector<16xf32>
    %9 = vector.multi_reduction <add>, %6, %cst_5 [1] : vector<16x16xf32> to vector<16xf32>
    %10 = vector.shape_cast %9 : vector<16xf32> to vector<16x1xf32>
    %cst_6 = arith.constant 1.600000e+01 : f32
    %11 = vector.broadcast %cst_6 : f32 to vector<16x1xf32>
    %12 = arith.divf %10, %11 : vector<16x1xf32>
    %13 = vector.broadcast %12 : vector<16x1xf32> to vector<16x16xf32>
    %14 = arith.subf %6, %13 : vector<16x16xf32>
    %15 = arith.mulf %14, %14 : vector<16x16xf32>
    %cst_7 = arith.constant dense<0.000000e+00> : vector<16xf32>
    %16 = vector.multi_reduction <add>, %15, %cst_7 [1] : vector<16x16xf32> to vector<16xf32>
    %17 = vector.shape_cast %16 : vector<16xf32> to vector<16x1xf32>
    %cst_8 = arith.constant 1.600000e+01 : f32
    %18 = vector.broadcast %cst_8 : f32 to vector<16x1xf32>
    %19 = arith.divf %17, %18 : vector<16x1xf32>
    %20 = vector.broadcast %12 : vector<16x1xf32> to vector<16x16xf32>
    %21 = arith.subf %6, %20 : vector<16x16xf32>
    %cst_9 = arith.constant 9.99999996E-13 : f32
    %22 = vector.broadcast %cst_9 : f32 to vector<16x1xf32>
    %23 = arith.addf %19, %22 : vector<16x1xf32>
    %24 = math.rsqrt %23 : vector<16x1xf32>
    %25 = vector.broadcast %24 : vector<16x1xf32> to vector<16x16xf32>
    %26 = arith.mulf %21, %25 : vector<16x16xf32>
    %27 = vector.broadcast %7 : vector<1x16xf32> to vector<16x16xf32>
    %28 = arith.mulf %26, %27 : vector<16x16xf32>
    %29 = vector.broadcast %8 : vector<1x16xf32> to vector<16x16xf32>
    %30 = arith.addf %28, %29 : vector<16x16xf32>
    %c0_10 = arith.constant 0 : index
    %c0_11 = arith.constant 0 : index
    %31 = vector.load %arg1[%c0_10, %c0_11] : memref<16x3xf32, #tpu.memory_space<vmem>>, vector<16x3xf32>
    %c0_12 = arith.constant 0 : index
    %c0_13 = arith.constant 0 : index
    %32 = vector.load %arg4[%c0_12, %c0_13] : memref<3x16xf32, #tpu.memory_space<vmem>>, vector<3x16xf32>
    %cst_14 = arith.constant dense<0.000000e+00> : vector<16x16xf32>
    %33 = tpu.matmul %31, %32, %cst_14 {dimension_numbers = #tpu.dot_dimension_numbers<[1], [0], [0], [1], [0, 0, 1, 1], [], []>} : vector<16x3xf32>, vector<3x16xf32>, vector<16x16xf32> -> vector<16x16xf32>
    %34 = vector.extract_strided_slice %0 {offsets = [3, 0], sizes = [1, 16], strides = [1, 1]} : vector<8x16xf32> to vector<1x16xf32>
    %35 = vector.broadcast %34 : vector<1x16xf32> to vector<16x16xf32>
    %36 = arith.addf %33, %35 : vector<16x16xf32>
    %37 = vector.extract_strided_slice %0 {offsets = [4, 0], sizes = [1, 16], strides = [1, 1]} : vector<8x16xf32> to vector<1x16xf32>
    %38 = vector.extract_strided_slice %0 {offsets = [5, 0], sizes = [1, 16], strides = [1, 1]} : vector<8x16xf32> to vector<1x16xf32>
    %cst_15 = arith.constant dense<0.000000e+00> : vector<16xf32>
    %39 = vector.multi_reduction <add>, %36, %cst_15 [1] : vector<16x16xf32> to vector<16xf32>
    %40 = vector.shape_cast %39 : vector<16xf32> to vector<16x1xf32>
    %cst_16 = arith.constant 1.600000e+01 : f32
    %41 = vector.broadcast %cst_16 : f32 to vector<16x1xf32>
    %42 = arith.divf %40, %41 : vector<16x1xf32>
    %43 = vector.broadcast %42 : vector<16x1xf32> to vector<16x16xf32>
    %44 = arith.subf %36, %43 : vector<16x16xf32>
    %45 = arith.mulf %44, %44 : vector<16x16xf32>
    %cst_17 = arith.constant dense<0.000000e+00> : vector<16xf32>
    %46 = vector.multi_reduction <add>, %45, %cst_17 [1] : vector<16x16xf32> to vector<16xf32>
    %47 = vector.shape_cast %46 : vector<16xf32> to vector<16x1xf32>
    %cst_18 = arith.constant 1.600000e+01 : f32
    %48 = vector.broadcast %cst_18 : f32 to vector<16x1xf32>
    %49 = arith.divf %47, %48 : vector<16x1xf32>
    %50 = vector.broadcast %42 : vector<16x1xf32> to vector<16x16xf32>
    %51 = arith.subf %36, %50 : vector<16x16xf32>
    %cst_19 = arith.constant 9.99999996E-13 : f32
    %52 = vector.broadcast %cst_19 : f32 to vector<16x1xf32>
    %53 = arith.addf %49, %52 : vector<16x1xf32>
    %54 = math.rsqrt %53 : vector<16x1xf32>
    %55 = vector.broadcast %54 : vector<16x1xf32> to vector<16x16xf32>
    %56 = arith.mulf %51, %55 : vector<16x16xf32>
    %57 = vector.broadcast %37 : vector<1x16xf32> to vector<16x16xf32>
    %58 = arith.mulf %56, %57 : vector<16x16xf32>
    %59 = vector.broadcast %38 : vector<1x16xf32> to vector<16x16xf32>
    %60 = arith.addf %58, %59 : vector<16x16xf32>
    %61 = tpu.concatenate %30, %60 in 1 : vector<16x16xf32>, vector<16x16xf32> -> vector<16x32xf32>
    %c0_20 = arith.constant 0 : index
    %c0_21 = arith.constant 0 : index
    %62 = vector.load %arg7[%c0_20, %c0_21] : memref<4x32xf32, #tpu.memory_space<vmem>>, vector<4x32xf32>
    %c0_22 = arith.constant 0 : index
    %c0_23 = arith.constant 0 : index
    %63 = vector.load %arg6[%c0_22, %c0_23] : memref<8x32xf32, #tpu.memory_space<vmem>>, vector<8x32xf32>
    %64 = tpu.concatenate %63, %63 in 0 : vector<8x32xf32>, vector<8x32xf32> -> vector<16x32xf32>
    %65 = arith.addf %61, %64 : vector<16x32xf32>
    %66 = vector.extract_strided_slice %62 {offsets = [0, 0], sizes = [1, 32], strides = [1, 1]} : vector<4x32xf32> to vector<1x32xf32>
    %67 = vector.broadcast %66 : vector<1x32xf32> to vector<16x32xf32>
    %68 = arith.addf %65, %67 : vector<16x32xf32>
    %69 = vector.extract_strided_slice %62 {offsets = [1, 0], sizes = [1, 32], strides = [1, 1]} : vector<4x32xf32> to vector<1x32xf32>
    %70 = vector.extract_strided_slice %62 {offsets = [2, 0], sizes = [1, 32], strides = [1, 1]} : vector<4x32xf32> to vector<1x32xf32>
    %cst_24 = arith.constant dense<0.000000e+00> : vector<16xf32>
    %71 = vector.multi_reduction <add>, %68, %cst_24 [1] : vector<16x32xf32> to vector<16xf32>
    %72 = vector.shape_cast %71 : vector<16xf32> to vector<16x1xf32>
    %cst_25 = arith.constant 3.200000e+01 : f32
    %73 = vector.broadcast %cst_25 : f32 to vector<16x1xf32>
    %74 = arith.divf %72, %73 : vector<16x1xf32>
    %75 = vector.broadcast %74 : vector<16x1xf32> to vector<16x32xf32>
    %76 = arith.subf %68, %75 : vector<16x32xf32>
    %77 = arith.mulf %76, %76 : vector<16x32xf32>
    %cst_26 = arith.constant dense<0.000000e+00> : vector<16xf32>
    %78 = vector.multi_reduction <add>, %77, %cst_26 [1] : vector<16x32xf32> to vector<16xf32>
    %79 = vector.shape_cast %78 : vector<16xf32> to vector<16x1xf32>
    %cst_27 = arith.constant 3.200000e+01 : f32
    %80 = vector.broadcast %cst_27 : f32 to vector<16x1xf32>
    %81 = arith.divf %79, %80 : vector<16x1xf32>
    %82 = vector.broadcast %74 : vector<16x1xf32> to vector<16x32xf32>
    %83 = arith.subf %68, %82 : vector<16x32xf32>
    %cst_28 = arith.constant 9.99999996E-13 : f32
    %84 = vector.broadcast %cst_28 : f32 to vector<16x1xf32>
    %85 = arith.addf %81, %84 : vector<16x1xf32>
    %86 = math.rsqrt %85 : vector<16x1xf32>
    %87 = vector.broadcast %86 : vector<16x1xf32> to vector<16x32xf32>
    %88 = arith.mulf %83, %87 : vector<16x32xf32>
    %89 = vector.broadcast %69 : vector<1x32xf32> to vector<16x32xf32>
    %90 = arith.mulf %88, %89 : vector<16x32xf32>
    %91 = vector.broadcast %70 : vector<1x32xf32> to vector<16x32xf32>
    %92 = arith.addf %90, %91 : vector<16x32xf32>
    %c0_29 = arith.constant 0 : index
    %c0_30 = arith.constant 0 : index
    %93 = vector.load %arg2[%c0_29, %c0_30] : memref<2x8xf32, #tpu.memory_space<vmem>>, vector<2x8xf32>
    %cst_31 = arith.constant 1.000000e+00 : f32
    %94 = vector.broadcast %cst_31 : f32 to vector<2x8xf32>
    %95 = arith.subf %94, %93 : vector<2x8xf32>
    %cst_32 = arith.constant -1.000000e+04 : f32
    %96 = vector.broadcast %cst_32 : f32 to vector<2x8xf32>
    %97 = arith.mulf %95, %96 : vector<2x8xf32>
    %c0_33 = arith.constant 0 : index
    %c0_34 = arith.constant 0 : index
    %c0_35 = arith.constant 0 : index
    %98 = vector.load %arg11[%c0_33, %c0_34, %c0_35] : memref<2x8x32xf32, #tpu.memory_space<vmem>>, vector<1x8x32xf32>
    %99 = vector.shape_cast %98 : vector<1x8x32xf32> to vector<8x32xf32>
    %c0_36 = arith.constant 0 : index
    %c0_37 = arith.constant 0 : index
    %c0_38 = arith.constant 0 : index
    %100 = vector.load %arg8[%c0_36, %c0_37, %c0_38] : memref<2x32x96xf32, #tpu.memory_space<vmem>>, vector<1x32x96xf32>
    %101 = vector.shape_cast %100 : vector<1x32x96xf32> to vector<32x96xf32>
    %cst_39 = arith.constant dense<0.000000e+00> : vector<16x96xf32>
    %102 = tpu.matmul %92, %101, %cst_39 {dimension_numbers = #tpu.dot_dimension_numbers<[1], [0], [0], [1], [0, 0, 1, 1], [], []>} : vector<16x32xf32>, vector<32x96xf32>, vector<16x96xf32> -> vector<16x96xf32>
    %c0_40 = arith.constant 0 : index
    %c0_41 = arith.constant 0 : index
    %c0_42 = arith.constant 0 : index
    %103 = vector.load %arg10[%c0_40, %c0_41, %c0_42] : memref<2x1x96xf32, #tpu.memory_space<vmem>>, vector<1x1x96xf32>
    %104 = vector.shape_cast %103 : vector<1x1x96xf32> to vector<1x96xf32>
    %105 = vector.broadcast %104 : vector<1x96xf32> to vector<16x96xf32>
    %106 = arith.addf %102, %105 : vector<16x96xf32>
    %107 = vector.shape_cast %106 : vector<16x96xf32> to vector<2x8x96xf32>
    %108 = vector.extract_strided_slice %107 {offsets = [0, 0, 0], sizes = [2, 8, 8], strides = [1, 1, 1]} : vector<2x8x96xf32> to vector<2x8x8xf32>
    %109 = vector.extract_strided_slice %107 {offsets = [0, 0, 32], sizes = [2, 8, 8], strides = [1, 1, 1]} : vector<2x8x96xf32> to vector<2x8x8xf32>
    %110 = vector.extract_strided_slice %107 {offsets = [0, 0, 64], sizes = [2, 8, 8], strides = [1, 1, 1]} : vector<2x8x96xf32> to vector<2x8x8xf32>
    "tpu.trace_start"() <{level = 10 : i32, message = "bqd,bkd->bqk"}> : () -> ()
    %cst_43 = arith.constant dense<0.000000e+00> : vector<2x8x8xf32>
    %111 = tpu.matmul %108, %109, %cst_43 {dimension_numbers = #tpu.dot_dimension_numbers<[2], [2], [1], [1], [0, 0, 0, 1, 1, 1], [0], [0]>} : vector<2x8x8xf32>, vector<2x8x8xf32>, vector<2x8x8xf32> -> vector<2x8x8xf32>
    "tpu.trace_stop"() : () -> ()
    %cst_44 = arith.constant 0.353553385 : f32
    %112 = vector.broadcast %cst_44 : f32 to vector<2x8x8xf32>
    %113 = arith.mulf %111, %112 : vector<2x8x8xf32>
    %114 = vector.shape_cast %97 : vector<2x8xf32> to vector<2x1x8xf32>
    %115 = vector.broadcast %114 : vector<2x1x8xf32> to vector<2x8x8xf32>
    %116 = arith.addf %113, %115 : vector<2x8x8xf32>
    %cst_45 = arith.constant dense<0xFF800000> : vector<2x8xf32>
    %117 = vector.multi_reduction <maximumf>, %116, %cst_45 [2] : vector<2x8x8xf32> to vector<2x8xf32>
    %118 = vector.shape_cast %117 : vector<2x8xf32> to vector<2x8x1xf32>
    %119 = vector.broadcast %118 : vector<2x8x1xf32> to vector<2x8x8xf32>
    %120 = arith.subf %116, %119 : vector<2x8x8xf32>
    %121 = math.exp %120 : vector<2x8x8xf32>
    %cst_46 = arith.constant dense<0.000000e+00> : vector<2x8xf32>
    %122 = vector.multi_reduction <add>, %121, %cst_46 [2] : vector<2x8x8xf32> to vector<2x8xf32>
    %123 = vector.shape_cast %122 : vector<2x8xf32> to vector<2x8x1xf32>
    %124 = tpu.reciprocal %123 {approx = true} : vector<2x8x1xf32> -> vector<2x8x1xf32>
    %125 = vector.broadcast %124 : vector<2x8x1xf32> to vector<2x8x8xf32>
    %126 = arith.mulf %121, %125 : vector<2x8x8xf32>
    "tpu.trace_start"() <{level = 10 : i32, message = "bqk,bkd->bqd"}> : () -> ()
    %cst_47 = arith.constant dense<0.000000e+00> : vector<2x8x8xf32>
    %127 = tpu.matmul %126, %110, %cst_47 {dimension_numbers = #tpu.dot_dimension_numbers<[2], [1], [1], [2], [0, 0, 0, 1, 1, 2], [0], [0]>} : vector<2x8x8xf32>, vector<2x8x8xf32>, vector<2x8x8xf32> -> vector<2x8x8xf32>
    "tpu.trace_stop"() : () -> ()
    %128 = vector.extract_strided_slice %107 {offsets = [0, 0, 8], sizes = [2, 8, 8], strides = [1, 1, 1]} : vector<2x8x96xf32> to vector<2x8x8xf32>
    %129 = vector.extract_strided_slice %107 {offsets = [0, 0, 40], sizes = [2, 8, 8], strides = [1, 1, 1]} : vector<2x8x96xf32> to vector<2x8x8xf32>
    %130 = vector.extract_strided_slice %107 {offsets = [0, 0, 72], sizes = [2, 8, 8], strides = [1, 1, 1]} : vector<2x8x96xf32> to vector<2x8x8xf32>
    "tpu.trace_start"() <{level = 10 : i32, message = "bqd,bkd->bqk"}> : () -> ()
    %cst_48 = arith.constant dense<0.000000e+00> : vector<2x8x8xf32>
    %131 = tpu.matmul %128, %129, %cst_48 {dimension_numbers = #tpu.dot_dimension_numbers<[2], [2], [1], [1], [0, 0, 0, 1, 1, 1], [0], [0]>} : vector<2x8x8xf32>, vector<2x8x8xf32>, vector<2x8x8xf32> -> vector<2x8x8xf32>
    "tpu.trace_stop"() : () -> ()
    %cst_49 = arith.constant 0.353553385 : f32
    %132 = vector.broadcast %cst_49 : f32 to vector<2x8x8xf32>
    %133 = arith.mulf %131, %132 : vector<2x8x8xf32>
    %134 = vector.shape_cast %97 : vector<2x8xf32> to vector<2x1x8xf32>
    %135 = vector.broadcast %134 : vector<2x1x8xf32> to vector<2x8x8xf32>
    %136 = arith.addf %133, %135 : vector<2x8x8xf32>
    %cst_50 = arith.constant dense<0xFF800000> : vector<2x8xf32>
    %137 = vector.multi_reduction <maximumf>, %136, %cst_50 [2] : vector<2x8x8xf32> to vector<2x8xf32>
    %138 = vector.shape_cast %137 : vector<2x8xf32> to vector<2x8x1xf32>
    %139 = vector.broadcast %138 : vector<2x8x1xf32> to vector<2x8x8xf32>
    %140 = arith.subf %136, %139 : vector<2x8x8xf32>
    %141 = math.exp %140 : vector<2x8x8xf32>
    %cst_51 = arith.constant dense<0.000000e+00> : vector<2x8xf32>
    %142 = vector.multi_reduction <add>, %141, %cst_51 [2] : vector<2x8x8xf32> to vector<2x8xf32>
    %143 = vector.shape_cast %142 : vector<2x8xf32> to vector<2x8x1xf32>
    %144 = tpu.reciprocal %143 {approx = true} : vector<2x8x1xf32> -> vector<2x8x1xf32>
    %145 = vector.broadcast %144 : vector<2x8x1xf32> to vector<2x8x8xf32>
    %146 = arith.mulf %141, %145 : vector<2x8x8xf32>
    "tpu.trace_start"() <{level = 10 : i32, message = "bqk,bkd->bqd"}> : () -> ()
    %cst_52 = arith.constant dense<0.000000e+00> : vector<2x8x8xf32>
    %147 = tpu.matmul %146, %130, %cst_52 {dimension_numbers = #tpu.dot_dimension_numbers<[2], [1], [1], [2], [0, 0, 0, 1, 1, 2], [0], [0]>} : vector<2x8x8xf32>, vector<2x8x8xf32>, vector<2x8x8xf32> -> vector<2x8x8xf32>
    "tpu.trace_stop"() : () -> ()
    %148 = vector.extract_strided_slice %107 {offsets = [0, 0, 16], sizes = [2, 8, 8], strides = [1, 1, 1]} : vector<2x8x96xf32> to vector<2x8x8xf32>
    %149 = vector.extract_strided_slice %107 {offsets = [0, 0, 48], sizes = [2, 8, 8], strides = [1, 1, 1]} : vector<2x8x96xf32> to vector<2x8x8xf32>
    %150 = vector.extract_strided_slice %107 {offsets = [0, 0, 80], sizes = [2, 8, 8], strides = [1, 1, 1]} : vector<2x8x96xf32> to vector<2x8x8xf32>
    "tpu.trace_start"() <{level = 10 : i32, message = "bqd,bkd->bqk"}> : () -> ()
    %cst_53 = arith.constant dense<0.000000e+00> : vector<2x8x8xf32>
    %151 = tpu.matmul %148, %149, %cst_53 {dimension_numbers = #tpu.dot_dimension_numbers<[2], [2], [1], [1], [0, 0, 0, 1, 1, 1], [0], [0]>} : vector<2x8x8xf32>, vector<2x8x8xf32>, vector<2x8x8xf32> -> vector<2x8x8xf32>
    "tpu.trace_stop"() : () -> ()
    %cst_54 = arith.constant 0.353553385 : f32
    %152 = vector.broadcast %cst_54 : f32 to vector<2x8x8xf32>
    %153 = arith.mulf %151, %152 : vector<2x8x8xf32>
    %154 = vector.shape_cast %97 : vector<2x8xf32> to vector<2x1x8xf32>
    %155 = vector.broadcast %154 : vector<2x1x8xf32> to vector<2x8x8xf32>
    %156 = arith.addf %153, %155 : vector<2x8x8xf32>
    %cst_55 = arith.constant dense<0xFF800000> : vector<2x8xf32>
    %157 = vector.multi_reduction <maximumf>, %156, %cst_55 [2] : vector<2x8x8xf32> to vector<2x8xf32>
    %158 = vector.shape_cast %157 : vector<2x8xf32> to vector<2x8x1xf32>
    %159 = vector.broadcast %158 : vector<2x8x1xf32> to vector<2x8x8xf32>
    %160 = arith.subf %156, %159 : vector<2x8x8xf32>
    %161 = math.exp %160 : vector<2x8x8xf32>
    %cst_56 = arith.constant dense<0.000000e+00> : vector<2x8xf32>
    %162 = vector.multi_reduction <add>, %161, %cst_56 [2] : vector<2x8x8xf32> to vector<2x8xf32>
    %163 = vector.shape_cast %162 : vector<2x8xf32> to vector<2x8x1xf32>
    %164 = tpu.reciprocal %163 {approx = true} : vector<2x8x1xf32> -> vector<2x8x1xf32>
    %165 = vector.broadcast %164 : vector<2x8x1xf32> to vector<2x8x8xf32>
    %166 = arith.mulf %161, %165 : vector<2x8x8xf32>
    "tpu.trace_start"() <{level = 10 : i32, message = "bqk,bkd->bqd"}> : () -> ()
    %cst_57 = arith.constant dense<0.000000e+00> : vector<2x8x8xf32>
    %167 = tpu.matmul %166, %150, %cst_57 {dimension_numbers = #tpu.dot_dimension_numbers<[2], [1], [1], [2], [0, 0, 0, 1, 1, 2], [0], [0]>} : vector<2x8x8xf32>, vector<2x8x8xf32>, vector<2x8x8xf32> -> vector<2x8x8xf32>
    "tpu.trace_stop"() : () -> ()
    %168 = vector.extract_strided_slice %107 {offsets = [0, 0, 24], sizes = [2, 8, 8], strides = [1, 1, 1]} : vector<2x8x96xf32> to vector<2x8x8xf32>
    %169 = vector.extract_strided_slice %107 {offsets = [0, 0, 56], sizes = [2, 8, 8], strides = [1, 1, 1]} : vector<2x8x96xf32> to vector<2x8x8xf32>
    %170 = vector.extract_strided_slice %107 {offsets = [0, 0, 88], sizes = [2, 8, 8], strides = [1, 1, 1]} : vector<2x8x96xf32> to vector<2x8x8xf32>
    "tpu.trace_start"() <{level = 10 : i32, message = "bqd,bkd->bqk"}> : () -> ()
    %cst_58 = arith.constant dense<0.000000e+00> : vector<2x8x8xf32>
    %171 = tpu.matmul %168, %169, %cst_58 {dimension_numbers = #tpu.dot_dimension_numbers<[2], [2], [1], [1], [0, 0, 0, 1, 1, 1], [0], [0]>} : vector<2x8x8xf32>, vector<2x8x8xf32>, vector<2x8x8xf32> -> vector<2x8x8xf32>
    "tpu.trace_stop"() : () -> ()
    %cst_59 = arith.constant 0.353553385 : f32
    %172 = vector.broadcast %cst_59 : f32 to vector<2x8x8xf32>
    %173 = arith.mulf %171, %172 : vector<2x8x8xf32>
    %174 = vector.shape_cast %97 : vector<2x8xf32> to vector<2x1x8xf32>
    %175 = vector.broadcast %174 : vector<2x1x8xf32> to vector<2x8x8xf32>
    %176 = arith.addf %173, %175 : vector<2x8x8xf32>
    %cst_60 = arith.constant dense<0xFF800000> : vector<2x8xf32>
    %177 = vector.multi_reduction <maximumf>, %176, %cst_60 [2] : vector<2x8x8xf32> to vector<2x8xf32>
    %178 = vector.shape_cast %177 : vector<2x8xf32> to vector<2x8x1xf32>
    %179 = vector.broadcast %178 : vector<2x8x1xf32> to vector<2x8x8xf32>
    %180 = arith.subf %176, %179 : vector<2x8x8xf32>
    %181 = math.exp %180 : vector<2x8x8xf32>
    %cst_61 = arith.constant dense<0.000000e+00> : vector<2x8xf32>
    %182 = vector.multi_reduction <add>, %181, %cst_61 [2] : vector<2x8x8xf32> to vector<2x8xf32>
    %183 = vector.shape_cast %182 : vector<2x8xf32> to vector<2x8x1xf32>
    %184 = tpu.reciprocal %183 {approx = true} : vector<2x8x1xf32> -> vector<2x8x1xf32>
    %185 = vector.broadcast %184 : vector<2x8x1xf32> to vector<2x8x8xf32>
    %186 = arith.mulf %181, %185 : vector<2x8x8xf32>
    "tpu.trace_start"() <{level = 10 : i32, message = "bqk,bkd->bqd"}> : () -> ()
    %cst_62 = arith.constant dense<0.000000e+00> : vector<2x8x8xf32>
    %187 = tpu.matmul %186, %170, %cst_62 {dimension_numbers = #tpu.dot_dimension_numbers<[2], [1], [1], [2], [0, 0, 0, 1, 1, 2], [0], [0]>} : vector<2x8x8xf32>, vector<2x8x8xf32>, vector<2x8x8xf32> -> vector<2x8x8xf32>
    "tpu.trace_stop"() : () -> ()
    %188 = tpu.concatenate %127, %147, %167, %187 in 2 : vector<2x8x8xf32>, vector<2x8x8xf32>, vector<2x8x8xf32>, vector<2x8x8xf32> -> vector<2x8x32xf32>
    %189 = vector.shape_cast %188 : vector<2x8x32xf32> to vector<16x32xf32>
    %c0_63 = arith.constant 0 : index
    %c0_64 = arith.constant 0 : index
    %c0_65 = arith.constant 0 : index
    %c0_66 = arith.constant 0 : index
    %190 = vector.load %arg9[%c0_63, %c0_64, %c0_65, %c0_66] : memref<2x3x32x32xf32, #tpu.memory_space<vmem>>, vector<1x1x32x32xf32>
    %191 = vector.shape_cast %190 : vector<1x1x32x32xf32> to vector<32x32xf32>
    %cst_67 = arith.constant dense<0.000000e+00> : vector<16x32xf32>
    %192 = tpu.matmul %189, %191, %cst_67 {dimension_numbers = #tpu.dot_dimension_numbers<[1], [0], [0], [1], [0, 0, 1, 1], [], []>} : vector<16x32xf32>, vector<32x32xf32>, vector<16x32xf32> -> vector<16x32xf32>
    %193 = vector.extract_strided_slice %99 {offsets = [0, 0], sizes = [1, 32], strides = [1, 1]} : vector<8x32xf32> to vector<1x32xf32>
    %194 = vector.broadcast %193 : vector<1x32xf32> to vector<16x32xf32>
    %195 = arith.addf %192, %194 : vector<16x32xf32>
    %196 = arith.addf %195, %92 : vector<16x32xf32>
    %197 = vector.extract_strided_slice %99 {offsets = [1, 0], sizes = [1, 32], strides = [1, 1]} : vector<8x32xf32> to vector<1x32xf32>
    %198 = vector.extract_strided_slice %99 {offsets = [2, 0], sizes = [1, 32], strides = [1, 1]} : vector<8x32xf32> to vector<1x32xf32>
    %cst_68 = arith.constant dense<0.000000e+00> : vector<16xf32>
    %199 = vector.multi_reduction <add>, %196, %cst_68 [1] : vector<16x32xf32> to vector<16xf32>
    %200 = vector.shape_cast %199 : vector<16xf32> to vector<16x1xf32>
    %cst_69 = arith.constant 3.200000e+01 : f32
    %201 = vector.broadcast %cst_69 : f32 to vector<16x1xf32>
    %202 = arith.divf %200, %201 : vector<16x1xf32>
    %203 = vector.broadcast %202 : vector<16x1xf32> to vector<16x32xf32>
    %204 = arith.subf %196, %203 : vector<16x32xf32>
    %205 = arith.mulf %204, %204 : vector<16x32xf32>
    %cst_70 = arith.constant dense<0.000000e+00> : vector<16xf32>
    %206 = vector.multi_reduction <add>, %205, %cst_70 [1] : vector<16x32xf32> to vector<16xf32>
    %207 = vector.shape_cast %206 : vector<16xf32> to vector<16x1xf32>
    %cst_71 = arith.constant 3.200000e+01 : f32
    %208 = vector.broadcast %cst_71 : f32 to vector<16x1xf32>
    %209 = arith.divf %207, %208 : vector<16x1xf32>
    %210 = vector.broadcast %202 : vector<16x1xf32> to vector<16x32xf32>
    %211 = arith.subf %196, %210 : vector<16x32xf32>
    %cst_72 = arith.constant 9.99999996E-13 : f32
    %212 = vector.broadcast %cst_72 : f32 to vector<16x1xf32>
    %213 = arith.addf %209, %212 : vector<16x1xf32>
    %214 = math.rsqrt %213 : vector<16x1xf32>
    %215 = vector.broadcast %214 : vector<16x1xf32> to vector<16x32xf32>
    %216 = arith.mulf %211, %215 : vector<16x32xf32>
    %217 = vector.broadcast %197 : vector<1x32xf32> to vector<16x32xf32>
    %218 = arith.mulf %216, %217 : vector<16x32xf32>
    %219 = vector.broadcast %198 : vector<1x32xf32> to vector<16x32xf32>
    %220 = arith.addf %218, %219 : vector<16x32xf32>
    %c0_73 = arith.constant 0 : index
    %c1 = arith.constant 1 : index
    %c0_74 = arith.constant 0 : index
    %c0_75 = arith.constant 0 : index
    %221 = vector.load %arg9[%c0_73, %c1, %c0_74, %c0_75] : memref<2x3x32x32xf32, #tpu.memory_space<vmem>>, vector<1x1x32x32xf32>
    %222 = vector.shape_cast %221 : vector<1x1x32x32xf32> to vector<32x32xf32>
    %cst_76 = arith.constant dense<0.000000e+00> : vector<16x32xf32>
    %223 = tpu.matmul %220, %222, %cst_76 {dimension_numbers = #tpu.dot_dimension_numbers<[1], [0], [0], [1], [0, 0, 1, 1], [], []>} : vector<16x32xf32>, vector<32x32xf32>, vector<16x32xf32> -> vector<16x32xf32>
    %224 = vector.extract_strided_slice %99 {offsets = [3, 0], sizes = [1, 32], strides = [1, 1]} : vector<8x32xf32> to vector<1x32xf32>
    %225 = vector.broadcast %224 : vector<1x32xf32> to vector<16x32xf32>
    %226 = arith.addf %223, %225 : vector<16x32xf32>
    %cst_77 = arith.constant 5.000000e-01 : f32
    %227 = vector.broadcast %cst_77 : f32 to vector<16x32xf32>
    %228 = arith.mulf %227, %226 : vector<16x32xf32>
    %cst_78 = arith.constant 4.471500e-02 : f32
    %229 = vector.broadcast %cst_78 : f32 to vector<16x32xf32>
    %230 = arith.mulf %229, %226 : vector<16x32xf32>
    %231 = arith.mulf %230, %226 : vector<16x32xf32>
    %232 = arith.mulf %231, %226 : vector<16x32xf32>
    %233 = arith.addf %226, %232 : vector<16x32xf32>
    %cst_79 = arith.constant 0.797884583 : f32
    %234 = vector.broadcast %cst_79 : f32 to vector<16x32xf32>
    %235 = arith.mulf %234, %233 : vector<16x32xf32>
    %236 = math.tanh %235 : vector<16x32xf32>
    %cst_80 = arith.constant 1.000000e+00 : f32
    %237 = vector.broadcast %cst_80 : f32 to vector<16x32xf32>
    %238 = arith.addf %237, %236 : vector<16x32xf32>
    %239 = arith.mulf %228, %238 : vector<16x32xf32>
    %c0_81 = arith.constant 0 : index
    %c2 = arith.constant 2 : index
    %c0_82 = arith.constant 0 : index
    %c0_83 = arith.constant 0 : index
    %240 = vector.load %arg9[%c0_81, %c2, %c0_82, %c0_83] : memref<2x3x32x32xf32, #tpu.memory_space<vmem>>, vector<1x1x32x32xf32>
    %241 = vector.shape_cast %240 : vector<1x1x32x32xf32> to vector<32x32xf32>
    %cst_84 = arith.constant dense<0.000000e+00> : vector<16x32xf32>
    %242 = tpu.matmul %239, %241, %cst_84 {dimension_numbers = #tpu.dot_dimension_numbers<[1], [0], [0], [1], [0, 0, 1, 1], [], []>} : vector<16x32xf32>, vector<32x32xf32>, vector<16x32xf32> -> vector<16x32xf32>
    %243 = vector.extract_strided_slice %99 {offsets = [4, 0], sizes = [1, 32], strides = [1, 1]} : vector<8x32xf32> to vector<1x32xf32>
    %244 = vector.broadcast %243 : vector<1x32xf32> to vector<16x32xf32>
    %245 = arith.addf %242, %244 : vector<16x32xf32>
    %246 = arith.addf %245, %220 : vector<16x32xf32>
    %247 = vector.extract_strided_slice %99 {offsets = [5, 0], sizes = [1, 32], strides = [1, 1]} : vector<8x32xf32> to vector<1x32xf32>
    %248 = vector.extract_strided_slice %99 {offsets = [6, 0], sizes = [1, 32], strides = [1, 1]} : vector<8x32xf32> to vector<1x32xf32>
    %cst_85 = arith.constant dense<0.000000e+00> : vector<16xf32>
    %249 = vector.multi_reduction <add>, %246, %cst_85 [1] : vector<16x32xf32> to vector<16xf32>
    %250 = vector.shape_cast %249 : vector<16xf32> to vector<16x1xf32>
    %cst_86 = arith.constant 3.200000e+01 : f32
    %251 = vector.broadcast %cst_86 : f32 to vector<16x1xf32>
    %252 = arith.divf %250, %251 : vector<16x1xf32>
    %253 = vector.broadcast %252 : vector<16x1xf32> to vector<16x32xf32>
    %254 = arith.subf %246, %253 : vector<16x32xf32>
    %255 = arith.mulf %254, %254 : vector<16x32xf32>
    %cst_87 = arith.constant dense<0.000000e+00> : vector<16xf32>
    %256 = vector.multi_reduction <add>, %255, %cst_87 [1] : vector<16x32xf32> to vector<16xf32>
    %257 = vector.shape_cast %256 : vector<16xf32> to vector<16x1xf32>
    %cst_88 = arith.constant 3.200000e+01 : f32
    %258 = vector.broadcast %cst_88 : f32 to vector<16x1xf32>
    %259 = arith.divf %257, %258 : vector<16x1xf32>
    %260 = vector.broadcast %252 : vector<16x1xf32> to vector<16x32xf32>
    %261 = arith.subf %246, %260 : vector<16x32xf32>
    %cst_89 = arith.constant 9.99999996E-13 : f32
    %262 = vector.broadcast %cst_89 : f32 to vector<16x1xf32>
    %263 = arith.addf %259, %262 : vector<16x1xf32>
    %264 = math.rsqrt %263 : vector<16x1xf32>
    %265 = vector.broadcast %264 : vector<16x1xf32> to vector<16x32xf32>
    %266 = arith.mulf %261, %265 : vector<16x32xf32>
    %267 = vector.broadcast %247 : vector<1x32xf32> to vector<16x32xf32>
    %268 = arith.mulf %266, %267 : vector<16x32xf32>
    %269 = vector.broadcast %248 : vector<1x32xf32> to vector<16x32xf32>
    %270 = arith.addf %268, %269 : vector<16x32xf32>
    %c1_90 = arith.constant 1 : index
    %c0_91 = arith.constant 0 : index
    %c0_92 = arith.constant 0 : index
    %271 = vector.load %arg11[%c1_90, %c0_91, %c0_92] : memref<2x8x32xf32, #tpu.memory_space<vmem>>, vector<1x8x32xf32>
    %272 = vector.shape_cast %271 : vector<1x8x32xf32> to vector<8x32xf32>
    %c1_93 = arith.constant 1 : index
    %c0_94 = arith.constant 0 : index
    %c0_95 = arith.constant 0 : index
    %273 = vector.load %arg8[%c1_93, %c0_94, %c0_95] : memref<2x32x96xf32, #tpu.memory_space<vmem>>, vector<1x32x96xf32>
    %274 = vector.shape_cast %273 : vector<1x32x96xf32> to vector<32x96xf32>
    %cst_96 = arith.constant dense<0.000000e+00> : vector<16x96xf32>
    %275 = tpu.matmul %270, %274, %cst_96 {dimension_numbers = #tpu.dot_dimension_numbers<[1], [0], [0], [1], [0, 0, 1, 1], [], []>} : vector<16x32xf32>, vector<32x96xf32>, vector<16x96xf32> -> vector<16x96xf32>
    %c1_97 = arith.constant 1 : index
    %c0_98 = arith.constant 0 : index
    %c0_99 = arith.constant 0 : index
    %276 = vector.load %arg10[%c1_97, %c0_98, %c0_99] : memref<2x1x96xf32, #tpu.memory_space<vmem>>, vector<1x1x96xf32>
    %277 = vector.shape_cast %276 : vector<1x1x96xf32> to vector<1x96xf32>
    %278 = vector.broadcast %277 : vector<1x96xf32> to vector<16x96xf32>
    %279 = arith.addf %275, %278 : vector<16x96xf32>
    %280 = vector.shape_cast %279 : vector<16x96xf32> to vector<2x8x96xf32>
    %281 = vector.extract_strided_slice %280 {offsets = [0, 0, 0], sizes = [2, 8, 8], strides = [1, 1, 1]} : vector<2x8x96xf32> to vector<2x8x8xf32>
    %282 = vector.extract_strided_slice %280 {offsets = [0, 0, 32], sizes = [2, 8, 8], strides = [1, 1, 1]} : vector<2x8x96xf32> to vector<2x8x8xf32>
    %283 = vector.extract_strided_slice %280 {offsets = [0, 0, 64], sizes = [2, 8, 8], strides = [1, 1, 1]} : vector<2x8x96xf32> to vector<2x8x8xf32>
    "tpu.trace_start"() <{level = 10 : i32, message = "bqd,bkd->bqk"}> : () -> ()
    %cst_100 = arith.constant dense<0.000000e+00> : vector<2x8x8xf32>
    %284 = tpu.matmul %281, %282, %cst_100 {dimension_numbers = #tpu.dot_dimension_numbers<[2], [2], [1], [1], [0, 0, 0, 1, 1, 1], [0], [0]>} : vector<2x8x8xf32>, vector<2x8x8xf32>, vector<2x8x8xf32> -> vector<2x8x8xf32>
    "tpu.trace_stop"() : () -> ()
    %cst_101 = arith.constant 0.353553385 : f32
    %285 = vector.broadcast %cst_101 : f32 to vector<2x8x8xf32>
    %286 = arith.mulf %284, %285 : vector<2x8x8xf32>
    %287 = vector.shape_cast %97 : vector<2x8xf32> to vector<2x1x8xf32>
    %288 = vector.broadcast %287 : vector<2x1x8xf32> to vector<2x8x8xf32>
    %289 = arith.addf %286, %288 : vector<2x8x8xf32>
    %cst_102 = arith.constant dense<0xFF800000> : vector<2x8xf32>
    %290 = vector.multi_reduction <maximumf>, %289, %cst_102 [2] : vector<2x8x8xf32> to vector<2x8xf32>
    %291 = vector.shape_cast %290 : vector<2x8xf32> to vector<2x8x1xf32>
    %292 = vector.broadcast %291 : vector<2x8x1xf32> to vector<2x8x8xf32>
    %293 = arith.subf %289, %292 : vector<2x8x8xf32>
    %294 = math.exp %293 : vector<2x8x8xf32>
    %cst_103 = arith.constant dense<0.000000e+00> : vector<2x8xf32>
    %295 = vector.multi_reduction <add>, %294, %cst_103 [2] : vector<2x8x8xf32> to vector<2x8xf32>
    %296 = vector.shape_cast %295 : vector<2x8xf32> to vector<2x8x1xf32>
    %297 = tpu.reciprocal %296 {approx = true} : vector<2x8x1xf32> -> vector<2x8x1xf32>
    %298 = vector.broadcast %297 : vector<2x8x1xf32> to vector<2x8x8xf32>
    %299 = arith.mulf %294, %298 : vector<2x8x8xf32>
    "tpu.trace_start"() <{level = 10 : i32, message = "bqk,bkd->bqd"}> : () -> ()
    %cst_104 = arith.constant dense<0.000000e+00> : vector<2x8x8xf32>
    %300 = tpu.matmul %299, %283, %cst_104 {dimension_numbers = #tpu.dot_dimension_numbers<[2], [1], [1], [2], [0, 0, 0, 1, 1, 2], [0], [0]>} : vector<2x8x8xf32>, vector<2x8x8xf32>, vector<2x8x8xf32> -> vector<2x8x8xf32>
    "tpu.trace_stop"() : () -> ()
    %301 = vector.extract_strided_slice %280 {offsets = [0, 0, 8], sizes = [2, 8, 8], strides = [1, 1, 1]} : vector<2x8x96xf32> to vector<2x8x8xf32>
    %302 = vector.extract_strided_slice %280 {offsets = [0, 0, 40], sizes = [2, 8, 8], strides = [1, 1, 1]} : vector<2x8x96xf32> to vector<2x8x8xf32>
    %303 = vector.extract_strided_slice %280 {offsets = [0, 0, 72], sizes = [2, 8, 8], strides = [1, 1, 1]} : vector<2x8x96xf32> to vector<2x8x8xf32>
    "tpu.trace_start"() <{level = 10 : i32, message = "bqd,bkd->bqk"}> : () -> ()
    %cst_105 = arith.constant dense<0.000000e+00> : vector<2x8x8xf32>
    %304 = tpu.matmul %301, %302, %cst_105 {dimension_numbers = #tpu.dot_dimension_numbers<[2], [2], [1], [1], [0, 0, 0, 1, 1, 1], [0], [0]>} : vector<2x8x8xf32>, vector<2x8x8xf32>, vector<2x8x8xf32> -> vector<2x8x8xf32>
    "tpu.trace_stop"() : () -> ()
    %cst_106 = arith.constant 0.353553385 : f32
    %305 = vector.broadcast %cst_106 : f32 to vector<2x8x8xf32>
    %306 = arith.mulf %304, %305 : vector<2x8x8xf32>
    %307 = vector.shape_cast %97 : vector<2x8xf32> to vector<2x1x8xf32>
    %308 = vector.broadcast %307 : vector<2x1x8xf32> to vector<2x8x8xf32>
    %309 = arith.addf %306, %308 : vector<2x8x8xf32>
    %cst_107 = arith.constant dense<0xFF800000> : vector<2x8xf32>
    %310 = vector.multi_reduction <maximumf>, %309, %cst_107 [2] : vector<2x8x8xf32> to vector<2x8xf32>
    %311 = vector.shape_cast %310 : vector<2x8xf32> to vector<2x8x1xf32>
    %312 = vector.broadcast %311 : vector<2x8x1xf32> to vector<2x8x8xf32>
    %313 = arith.subf %309, %312 : vector<2x8x8xf32>
    %314 = math.exp %313 : vector<2x8x8xf32>
    %cst_108 = arith.constant dense<0.000000e+00> : vector<2x8xf32>
    %315 = vector.multi_reduction <add>, %314, %cst_108 [2] : vector<2x8x8xf32> to vector<2x8xf32>
    %316 = vector.shape_cast %315 : vector<2x8xf32> to vector<2x8x1xf32>
    %317 = tpu.reciprocal %316 {approx = true} : vector<2x8x1xf32> -> vector<2x8x1xf32>
    %318 = vector.broadcast %317 : vector<2x8x1xf32> to vector<2x8x8xf32>
    %319 = arith.mulf %314, %318 : vector<2x8x8xf32>
    "tpu.trace_start"() <{level = 10 : i32, message = "bqk,bkd->bqd"}> : () -> ()
    %cst_109 = arith.constant dense<0.000000e+00> : vector<2x8x8xf32>
    %320 = tpu.matmul %319, %303, %cst_109 {dimension_numbers = #tpu.dot_dimension_numbers<[2], [1], [1], [2], [0, 0, 0, 1, 1, 2], [0], [0]>} : vector<2x8x8xf32>, vector<2x8x8xf32>, vector<2x8x8xf32> -> vector<2x8x8xf32>
    "tpu.trace_stop"() : () -> ()
    %321 = vector.extract_strided_slice %280 {offsets = [0, 0, 16], sizes = [2, 8, 8], strides = [1, 1, 1]} : vector<2x8x96xf32> to vector<2x8x8xf32>
    %322 = vector.extract_strided_slice %280 {offsets = [0, 0, 48], sizes = [2, 8, 8], strides = [1, 1, 1]} : vector<2x8x96xf32> to vector<2x8x8xf32>
    %323 = vector.extract_strided_slice %280 {offsets = [0, 0, 80], sizes = [2, 8, 8], strides = [1, 1, 1]} : vector<2x8x96xf32> to vector<2x8x8xf32>
    "tpu.trace_start"() <{level = 10 : i32, message = "bqd,bkd->bqk"}> : () -> ()
    %cst_110 = arith.constant dense<0.000000e+00> : vector<2x8x8xf32>
    %324 = tpu.matmul %321, %322, %cst_110 {dimension_numbers = #tpu.dot_dimension_numbers<[2], [2], [1], [1], [0, 0, 0, 1, 1, 1], [0], [0]>} : vector<2x8x8xf32>, vector<2x8x8xf32>, vector<2x8x8xf32> -> vector<2x8x8xf32>
    "tpu.trace_stop"() : () -> ()
    %cst_111 = arith.constant 0.353553385 : f32
    %325 = vector.broadcast %cst_111 : f32 to vector<2x8x8xf32>
    %326 = arith.mulf %324, %325 : vector<2x8x8xf32>
    %327 = vector.shape_cast %97 : vector<2x8xf32> to vector<2x1x8xf32>
    %328 = vector.broadcast %327 : vector<2x1x8xf32> to vector<2x8x8xf32>
    %329 = arith.addf %326, %328 : vector<2x8x8xf32>
    %cst_112 = arith.constant dense<0xFF800000> : vector<2x8xf32>
    %330 = vector.multi_reduction <maximumf>, %329, %cst_112 [2] : vector<2x8x8xf32> to vector<2x8xf32>
    %331 = vector.shape_cast %330 : vector<2x8xf32> to vector<2x8x1xf32>
    %332 = vector.broadcast %331 : vector<2x8x1xf32> to vector<2x8x8xf32>
    %333 = arith.subf %329, %332 : vector<2x8x8xf32>
    %334 = math.exp %333 : vector<2x8x8xf32>
    %cst_113 = arith.constant dense<0.000000e+00> : vector<2x8xf32>
    %335 = vector.multi_reduction <add>, %334, %cst_113 [2] : vector<2x8x8xf32> to vector<2x8xf32>
    %336 = vector.shape_cast %335 : vector<2x8xf32> to vector<2x8x1xf32>
    %337 = tpu.reciprocal %336 {approx = true} : vector<2x8x1xf32> -> vector<2x8x1xf32>
    %338 = vector.broadcast %337 : vector<2x8x1xf32> to vector<2x8x8xf32>
    %339 = arith.mulf %334, %338 : vector<2x8x8xf32>
    "tpu.trace_start"() <{level = 10 : i32, message = "bqk,bkd->bqd"}> : () -> ()
    %cst_114 = arith.constant dense<0.000000e+00> : vector<2x8x8xf32>
    %340 = tpu.matmul %339, %323, %cst_114 {dimension_numbers = #tpu.dot_dimension_numbers<[2], [1], [1], [2], [0, 0, 0, 1, 1, 2], [0], [0]>} : vector<2x8x8xf32>, vector<2x8x8xf32>, vector<2x8x8xf32> -> vector<2x8x8xf32>
    "tpu.trace_stop"() : () -> ()
    %341 = vector.extract_strided_slice %280 {offsets = [0, 0, 24], sizes = [2, 8, 8], strides = [1, 1, 1]} : vector<2x8x96xf32> to vector<2x8x8xf32>
    %342 = vector.extract_strided_slice %280 {offsets = [0, 0, 56], sizes = [2, 8, 8], strides = [1, 1, 1]} : vector<2x8x96xf32> to vector<2x8x8xf32>
    %343 = vector.extract_strided_slice %280 {offsets = [0, 0, 88], sizes = [2, 8, 8], strides = [1, 1, 1]} : vector<2x8x96xf32> to vector<2x8x8xf32>
    "tpu.trace_start"() <{level = 10 : i32, message = "bqd,bkd->bqk"}> : () -> ()
    %cst_115 = arith.constant dense<0.000000e+00> : vector<2x8x8xf32>
    %344 = tpu.matmul %341, %342, %cst_115 {dimension_numbers = #tpu.dot_dimension_numbers<[2], [2], [1], [1], [0, 0, 0, 1, 1, 1], [0], [0]>} : vector<2x8x8xf32>, vector<2x8x8xf32>, vector<2x8x8xf32> -> vector<2x8x8xf32>
    "tpu.trace_stop"() : () -> ()
    %cst_116 = arith.constant 0.353553385 : f32
    %345 = vector.broadcast %cst_116 : f32 to vector<2x8x8xf32>
    %346 = arith.mulf %344, %345 : vector<2x8x8xf32>
    %347 = vector.shape_cast %97 : vector<2x8xf32> to vector<2x1x8xf32>
    %348 = vector.broadcast %347 : vector<2x1x8xf32> to vector<2x8x8xf32>
    %349 = arith.addf %346, %348 : vector<2x8x8xf32>
    %cst_117 = arith.constant dense<0xFF800000> : vector<2x8xf32>
    %350 = vector.multi_reduction <maximumf>, %349, %cst_117 [2] : vector<2x8x8xf32> to vector<2x8xf32>
    %351 = vector.shape_cast %350 : vector<2x8xf32> to vector<2x8x1xf32>
    %352 = vector.broadcast %351 : vector<2x8x1xf32> to vector<2x8x8xf32>
    %353 = arith.subf %349, %352 : vector<2x8x8xf32>
    %354 = math.exp %353 : vector<2x8x8xf32>
    %cst_118 = arith.constant dense<0.000000e+00> : vector<2x8xf32>
    %355 = vector.multi_reduction <add>, %354, %cst_118 [2] : vector<2x8x8xf32> to vector<2x8xf32>
    %356 = vector.shape_cast %355 : vector<2x8xf32> to vector<2x8x1xf32>
    %357 = tpu.reciprocal %356 {approx = true} : vector<2x8x1xf32> -> vector<2x8x1xf32>
    %358 = vector.broadcast %357 : vector<2x8x1xf32> to vector<2x8x8xf32>
    %359 = arith.mulf %354, %358 : vector<2x8x8xf32>
    "tpu.trace_start"() <{level = 10 : i32, message = "bqk,bkd->bqd"}> : () -> ()
    %cst_119 = arith.constant dense<0.000000e+00> : vector<2x8x8xf32>
    %360 = tpu.matmul %359, %343, %cst_119 {dimension_numbers = #tpu.dot_dimension_numbers<[2], [1], [1], [2], [0, 0, 0, 1, 1, 2], [0], [0]>} : vector<2x8x8xf32>, vector<2x8x8xf32>, vector<2x8x8xf32> -> vector<2x8x8xf32>
    "tpu.trace_stop"() : () -> ()
    %361 = tpu.concatenate %300, %320, %340, %360 in 2 : vector<2x8x8xf32>, vector<2x8x8xf32>, vector<2x8x8xf32>, vector<2x8x8xf32> -> vector<2x8x32xf32>
    %362 = vector.shape_cast %361 : vector<2x8x32xf32> to vector<16x32xf32>
    %c1_120 = arith.constant 1 : index
    %c0_121 = arith.constant 0 : index
    %c0_122 = arith.constant 0 : index
    %c0_123 = arith.constant 0 : index
    %363 = vector.load %arg9[%c1_120, %c0_121, %c0_122, %c0_123] : memref<2x3x32x32xf32, #tpu.memory_space<vmem>>, vector<1x1x32x32xf32>
    %364 = vector.shape_cast %363 : vector<1x1x32x32xf32> to vector<32x32xf32>
    %cst_124 = arith.constant dense<0.000000e+00> : vector<16x32xf32>
    %365 = tpu.matmul %362, %364, %cst_124 {dimension_numbers = #tpu.dot_dimension_numbers<[1], [0], [0], [1], [0, 0, 1, 1], [], []>} : vector<16x32xf32>, vector<32x32xf32>, vector<16x32xf32> -> vector<16x32xf32>
    %366 = vector.extract_strided_slice %272 {offsets = [0, 0], sizes = [1, 32], strides = [1, 1]} : vector<8x32xf32> to vector<1x32xf32>
    %367 = vector.broadcast %366 : vector<1x32xf32> to vector<16x32xf32>
    %368 = arith.addf %365, %367 : vector<16x32xf32>
    %369 = arith.addf %368, %270 : vector<16x32xf32>
    %370 = vector.extract_strided_slice %272 {offsets = [1, 0], sizes = [1, 32], strides = [1, 1]} : vector<8x32xf32> to vector<1x32xf32>
    %371 = vector.extract_strided_slice %272 {offsets = [2, 0], sizes = [1, 32], strides = [1, 1]} : vector<8x32xf32> to vector<1x32xf32>
    %cst_125 = arith.constant dense<0.000000e+00> : vector<16xf32>
    %372 = vector.multi_reduction <add>, %369, %cst_125 [1] : vector<16x32xf32> to vector<16xf32>
    %373 = vector.shape_cast %372 : vector<16xf32> to vector<16x1xf32>
    %cst_126 = arith.constant 3.200000e+01 : f32
    %374 = vector.broadcast %cst_126 : f32 to vector<16x1xf32>
    %375 = arith.divf %373, %374 : vector<16x1xf32>
    %376 = vector.broadcast %375 : vector<16x1xf32> to vector<16x32xf32>
    %377 = arith.subf %369, %376 : vector<16x32xf32>
    %378 = arith.mulf %377, %377 : vector<16x32xf32>
    %cst_127 = arith.constant dense<0.000000e+00> : vector<16xf32>
    %379 = vector.multi_reduction <add>, %378, %cst_127 [1] : vector<16x32xf32> to vector<16xf32>
    %380 = vector.shape_cast %379 : vector<16xf32> to vector<16x1xf32>
    %cst_128 = arith.constant 3.200000e+01 : f32
    %381 = vector.broadcast %cst_128 : f32 to vector<16x1xf32>
    %382 = arith.divf %380, %381 : vector<16x1xf32>
    %383 = vector.broadcast %375 : vector<16x1xf32> to vector<16x32xf32>
    %384 = arith.subf %369, %383 : vector<16x32xf32>
    %cst_129 = arith.constant 9.99999996E-13 : f32
    %385 = vector.broadcast %cst_129 : f32 to vector<16x1xf32>
    %386 = arith.addf %382, %385 : vector<16x1xf32>
    %387 = math.rsqrt %386 : vector<16x1xf32>
    %388 = vector.broadcast %387 : vector<16x1xf32> to vector<16x32xf32>
    %389 = arith.mulf %384, %388 : vector<16x32xf32>
    %390 = vector.broadcast %370 : vector<1x32xf32> to vector<16x32xf32>
    %391 = arith.mulf %389, %390 : vector<16x32xf32>
    %392 = vector.broadcast %371 : vector<1x32xf32> to vector<16x32xf32>
    %393 = arith.addf %391, %392 : vector<16x32xf32>
    %c1_130 = arith.constant 1 : index
    %c1_131 = arith.constant 1 : index
    %c0_132 = arith.constant 0 : index
    %c0_133 = arith.constant 0 : index
    %394 = vector.load %arg9[%c1_130, %c1_131, %c0_132, %c0_133] : memref<2x3x32x32xf32, #tpu.memory_space<vmem>>, vector<1x1x32x32xf32>
    %395 = vector.shape_cast %394 : vector<1x1x32x32xf32> to vector<32x32xf32>
    %cst_134 = arith.constant dense<0.000000e+00> : vector<16x32xf32>
    %396 = tpu.matmul %393, %395, %cst_134 {dimension_numbers = #tpu.dot_dimension_numbers<[1], [0], [0], [1], [0, 0, 1, 1], [], []>} : vector<16x32xf32>, vector<32x32xf32>, vector<16x32xf32> -> vector<16x32xf32>
    %397 = vector.extract_strided_slice %272 {offsets = [3, 0], sizes = [1, 32], strides = [1, 1]} : vector<8x32xf32> to vector<1x32xf32>
    %398 = vector.broadcast %397 : vector<1x32xf32> to vector<16x32xf32>
    %399 = arith.addf %396, %398 : vector<16x32xf32>
    %cst_135 = arith.constant 5.000000e-01 : f32
    %400 = vector.broadcast %cst_135 : f32 to vector<16x32xf32>
    %401 = arith.mulf %400, %399 : vector<16x32xf32>
    %cst_136 = arith.constant 4.471500e-02 : f32
    %402 = vector.broadcast %cst_136 : f32 to vector<16x32xf32>
    %403 = arith.mulf %402, %399 : vector<16x32xf32>
    %404 = arith.mulf %403, %399 : vector<16x32xf32>
    %405 = arith.mulf %404, %399 : vector<16x32xf32>
    %406 = arith.addf %399, %405 : vector<16x32xf32>
    %cst_137 = arith.constant 0.797884583 : f32
    %407 = vector.broadcast %cst_137 : f32 to vector<16x32xf32>
    %408 = arith.mulf %407, %406 : vector<16x32xf32>
    %409 = math.tanh %408 : vector<16x32xf32>
    %cst_138 = arith.constant 1.000000e+00 : f32
    %410 = vector.broadcast %cst_138 : f32 to vector<16x32xf32>
    %411 = arith.addf %410, %409 : vector<16x32xf32>
    %412 = arith.mulf %401, %411 : vector<16x32xf32>
    %c1_139 = arith.constant 1 : index
    %c2_140 = arith.constant 2 : index
    %c0_141 = arith.constant 0 : index
    %c0_142 = arith.constant 0 : index
    %413 = vector.load %arg9[%c1_139, %c2_140, %c0_141, %c0_142] : memref<2x3x32x32xf32, #tpu.memory_space<vmem>>, vector<1x1x32x32xf32>
    %414 = vector.shape_cast %413 : vector<1x1x32x32xf32> to vector<32x32xf32>
    %cst_143 = arith.constant dense<0.000000e+00> : vector<16x32xf32>
    %415 = tpu.matmul %412, %414, %cst_143 {dimension_numbers = #tpu.dot_dimension_numbers<[1], [0], [0], [1], [0, 0, 1, 1], [], []>} : vector<16x32xf32>, vector<32x32xf32>, vector<16x32xf32> -> vector<16x32xf32>
    %416 = vector.extract_strided_slice %272 {offsets = [4, 0], sizes = [1, 32], strides = [1, 1]} : vector<8x32xf32> to vector<1x32xf32>
    %417 = vector.broadcast %416 : vector<1x32xf32> to vector<16x32xf32>
    %418 = arith.addf %415, %417 : vector<16x32xf32>
    %419 = arith.addf %418, %393 : vector<16x32xf32>
    %420 = vector.extract_strided_slice %272 {offsets = [5, 0], sizes = [1, 32], strides = [1, 1]} : vector<8x32xf32> to vector<1x32xf32>
    %421 = vector.extract_strided_slice %272 {offsets = [6, 0], sizes = [1, 32], strides = [1, 1]} : vector<8x32xf32> to vector<1x32xf32>
    %cst_144 = arith.constant dense<0.000000e+00> : vector<16xf32>
    %422 = vector.multi_reduction <add>, %419, %cst_144 [1] : vector<16x32xf32> to vector<16xf32>
    %423 = vector.shape_cast %422 : vector<16xf32> to vector<16x1xf32>
    %cst_145 = arith.constant 3.200000e+01 : f32
    %424 = vector.broadcast %cst_145 : f32 to vector<16x1xf32>
    %425 = arith.divf %423, %424 : vector<16x1xf32>
    %426 = vector.broadcast %425 : vector<16x1xf32> to vector<16x32xf32>
    %427 = arith.subf %419, %426 : vector<16x32xf32>
    %428 = arith.mulf %427, %427 : vector<16x32xf32>
    %cst_146 = arith.constant dense<0.000000e+00> : vector<16xf32>
    %429 = vector.multi_reduction <add>, %428, %cst_146 [1] : vector<16x32xf32> to vector<16xf32>
    %430 = vector.shape_cast %429 : vector<16xf32> to vector<16x1xf32>
    %cst_147 = arith.constant 3.200000e+01 : f32
    %431 = vector.broadcast %cst_147 : f32 to vector<16x1xf32>
    %432 = arith.divf %430, %431 : vector<16x1xf32>
    %433 = vector.broadcast %425 : vector<16x1xf32> to vector<16x32xf32>
    %434 = arith.subf %419, %433 : vector<16x32xf32>
    %cst_148 = arith.constant 9.99999996E-13 : f32
    %435 = vector.broadcast %cst_148 : f32 to vector<16x1xf32>
    %436 = arith.addf %432, %435 : vector<16x1xf32>
    %437 = math.rsqrt %436 : vector<16x1xf32>
    %438 = vector.broadcast %437 : vector<16x1xf32> to vector<16x32xf32>
    %439 = arith.mulf %434, %438 : vector<16x32xf32>
    %440 = vector.broadcast %420 : vector<1x32xf32> to vector<16x32xf32>
    %441 = arith.mulf %439, %440 : vector<16x32xf32>
    %442 = vector.broadcast %421 : vector<1x32xf32> to vector<16x32xf32>
    %443 = arith.addf %441, %442 : vector<16x32xf32>
    %444 = tpu.iota {dimensions = array<i32: 1>} : vector<2x16xi32>
    %445 = tpu.iota {dimensions = array<i32: 0>} : vector<2x16xi32>
    %c8_i32 = arith.constant 8 : i32
    %446 = vector.broadcast %c8_i32 : i32 to vector<2x16xi32>
    %447 = arith.muli %445, %446 : vector<2x16xi32>
    %c7_i32 = arith.constant 7 : i32
    %448 = vector.broadcast %c7_i32 : i32 to vector<2x16xi32>
    %449 = arith.addi %447, %448 : vector<2x16xi32>
    %450 = arith.cmpi eq, %444, %449 : vector<2x16xi32>
    %451 = arith.extui %450 : vector<2x16xi1> to vector<2x16xi32>
    %452 = arith.sitofp %451 : vector<2x16xi32> to vector<2x16xf32>
    %cst_149 = arith.constant dense<0.000000e+00> : vector<2x32xf32>
    %453 = tpu.matmul %452, %443, %cst_149 {dimension_numbers = #tpu.dot_dimension_numbers<[1], [0], [0], [1], [0, 0, 1, 1], [], []>} : vector<2x16xf32>, vector<16x32xf32>, vector<2x32xf32> -> vector<2x32xf32>
    %c0_150 = arith.constant 0 : index
    %c0_151 = arith.constant 0 : index
    %454 = vector.load %arg14[%c0_150, %c0_151] : memref<4x32xf32, #tpu.memory_space<vmem>>, vector<4x32xf32>
    %c0_152 = arith.constant 0 : index
    %c0_153 = arith.constant 0 : index
    %455 = vector.load %arg12[%c0_152, %c0_153] : memref<32x32xf32, #tpu.memory_space<vmem>>, vector<32x32xf32>
    %cst_154 = arith.constant dense<0.000000e+00> : vector<2x32xf32>
    %456 = tpu.matmul %453, %455, %cst_154 {dimension_numbers = #tpu.dot_dimension_numbers<[1], [0], [0], [1], [0, 0, 1, 1], [], []>} : vector<2x32xf32>, vector<32x32xf32>, vector<2x32xf32> -> vector<2x32xf32>
    %457 = vector.extract_strided_slice %454 {offsets = [0, 0], sizes = [1, 32], strides = [1, 1]} : vector<4x32xf32> to vector<1x32xf32>
    %458 = vector.broadcast %457 : vector<1x32xf32> to vector<2x32xf32>
    %459 = arith.addf %456, %458 : vector<2x32xf32>
    %460 = vector.extract_strided_slice %454 {offsets = [1, 0], sizes = [1, 32], strides = [1, 1]} : vector<4x32xf32> to vector<1x32xf32>
    %461 = vector.extract_strided_slice %454 {offsets = [2, 0], sizes = [1, 32], strides = [1, 1]} : vector<4x32xf32> to vector<1x32xf32>
    %cst_155 = arith.constant dense<0.000000e+00> : vector<2xf32>
    %462 = vector.multi_reduction <add>, %459, %cst_155 [1] : vector<2x32xf32> to vector<2xf32>
    %463 = vector.shape_cast %462 : vector<2xf32> to vector<2x1xf32>
    %cst_156 = arith.constant 3.200000e+01 : f32
    %464 = vector.broadcast %cst_156 : f32 to vector<2x1xf32>
    %465 = arith.divf %463, %464 : vector<2x1xf32>
    %466 = vector.broadcast %465 : vector<2x1xf32> to vector<2x32xf32>
    %467 = arith.subf %459, %466 : vector<2x32xf32>
    %468 = arith.mulf %467, %467 : vector<2x32xf32>
    %cst_157 = arith.constant dense<0.000000e+00> : vector<2xf32>
    %469 = vector.multi_reduction <add>, %468, %cst_157 [1] : vector<2x32xf32> to vector<2xf32>
    %470 = vector.shape_cast %469 : vector<2xf32> to vector<2x1xf32>
    %cst_158 = arith.constant 3.200000e+01 : f32
    %471 = vector.broadcast %cst_158 : f32 to vector<2x1xf32>
    %472 = arith.divf %470, %471 : vector<2x1xf32>
    %473 = vector.broadcast %465 : vector<2x1xf32> to vector<2x32xf32>
    %474 = arith.subf %459, %473 : vector<2x32xf32>
    %cst_159 = arith.constant 9.99999996E-13 : f32
    %475 = vector.broadcast %cst_159 : f32 to vector<2x1xf32>
    %476 = arith.addf %472, %475 : vector<2x1xf32>
    %477 = math.rsqrt %476 : vector<2x1xf32>
    %478 = vector.broadcast %477 : vector<2x1xf32> to vector<2x32xf32>
    %479 = arith.mulf %474, %478 : vector<2x32xf32>
    %480 = vector.broadcast %460 : vector<1x32xf32> to vector<2x32xf32>
    %481 = arith.mulf %479, %480 : vector<2x32xf32>
    %482 = vector.broadcast %461 : vector<1x32xf32> to vector<2x32xf32>
    %483 = arith.addf %481, %482 : vector<2x32xf32>
    %cst_160 = arith.constant 0.000000e+00 : f32
    %484 = vector.broadcast %cst_160 : f32 to vector<2x32xf32>
    %485 = arith.maximumf %483, %484 : vector<2x32xf32>
    %c0_161 = arith.constant 0 : index
    %c0_162 = arith.constant 0 : index
    %486 = vector.load %arg13[%c0_161, %c0_162] : memref<32x1xf32, #tpu.memory_space<vmem>>, vector<32x1xf32>
    %cst_163 = arith.constant dense<0.000000e+00> : vector<2x1xf32>
    %487 = tpu.matmul %485, %486, %cst_163 {dimension_numbers = #tpu.dot_dimension_numbers<[1], [0], [0], [1], [0, 0, 1, 1], [], []>} : vector<2x32xf32>, vector<32x1xf32>, vector<2x1xf32> -> vector<2x1xf32>
    %488 = vector.extract_strided_slice %454 {offsets = [3, 0], sizes = [1, 1], strides = [1, 1]} : vector<4x32xf32> to vector<1x1xf32>
    %489 = vector.broadcast %488 : vector<1x1xf32> to vector<2x1xf32>
    %490 = arith.addf %487, %489 : vector<2x1xf32>
    %c0_164 = arith.constant 0 : index
    %c0_165 = arith.constant 0 : index
    %491 = vector.load %arg15[%c0_164, %c0_165] : memref<2x1xf32, #tpu.memory_space<vmem>>, vector<2x1xf32>
    tpu.vector_store %arg15[%c0_164, %c0_165], %490 {strides = array<i32>} : memref<2x1xf32, #tpu.memory_space<vmem>>, vector<2x1xf32>,
    return
  }
}

</mosaic_0001>

<bundles_post_ra>
// kernel: _lambda_.1
= control target key start
LH: loop header
LB: loop body
LE: loop exit
PB: predicated region body
PF: predicated region fallthrough
CT: control target
= control target key end

     0   :  { %vm194_vm0 = vcmask 1042432   ;;  %vm187_vm1 = vcmask 23552   ;;  %vm59_vm2 = vcmask 130048   ;;  %v55_v8 = vlaneseq  ;;  %s5065_s27 = smov 96   ;;  %s5069_s29 = smov 120   ;;  %s5838_s4 = inlined_call_operand.vmem [shape: f32[3,16], index: 4, kind: input, shape index: {}]   ;;  %s5839_s1 = inlined_call_operand.vmem [shape: f32[16,3], index: 1, kind: input, shape index: {}]   ;;  %s5840_s3 = inlined_call_operand.vmem [shape: f32[16,16], index: 3, kind: input, shape index: {}]   ;;  %s5841_s0 = inlined_call_operand.vmem [shape: f32[16,16], index: 0, kind: input, shape index: {}]   ;;  %s5842_s5 = inlined_call_operand.vmem [shape: f32[8,16], index: 5, kind: input, shape index: {}]   ;;  %s5843_s7 = inlined_call_operand.vmem [shape: f32[4,32], index: 7, kind: input, shape index: {}]   ;;  %s5844_s6 = inlined_call_operand.vmem [shape: f32[8,32], index: 6, kind: input, shape index: {}]   ;;  %s5845_s8 = inlined_call_operand.vmem [shape: f32[2,32,96], index: 8, kind: input, shape index: {}]   ;;  %s5846_s10 = inlined_call_operand.vmem [shape: f32[2,1,96], index: 10, kind: input, shape index: {}]   ;;  %s5847_s2 = inlined_call_operand.vmem [shape: f32[2,8], index: 2, kind: input, shape index: {}]   ;;  %s5848_s9 = inlined_call_operand.vmem [shape: f32[2,3,32,32], index: 9, kind: input, shape index: {}]   ;;  %s5849_s11 = inlined_call_operand.vmem [shape: f32[2,8,32], index: 11, kind: input, shape index: {}]   ;;  %s5850_s12 = inlined_call_operand.vmem [shape: f32[32,32], index: 12, kind: input, shape index: {}]   ;;  %s5851_s14 = inlined_call_operand.vmem [shape: f32[4,32], index: 14, kind: input, shape index: {}]   ;;  %s5852_s13 = inlined_call_operand.vmem [shape: f32[32,1], index: 13, kind: input, shape index: {}]   ;;  %s5853_s15 = inlined_call_operand.vmem [shape: f32[2,1], index: 15, kind: output, shape index: {}]  }
   0x1   :  { %v182_v0 = vld [vmem:[%s5838_s4] sm:$0x7]  ;;  %v181_v2 = vld [vmem:[%s5839_s1 + $0x8] sm:$0xff]  ;;  %vm331_vm3 = vcmask 261120   ;;  %vm5064_vm4 = vmmov 0   ;;  %vm470_vm5 = vcmask 64512  }
   0x2   :  { %v180_v1 = vld [vmem:[%s5839_s1] sm:$0xff]  ;;  %4577 = vmatprep.subr.msk.mxu1 %vm194_vm0, %v182_v0  ;;  %v54_v4 = vld [vmem:[%s5840_s3 + $0x8] sm:$0xff]  ;;  %v5184_v9 = vshrl.u32 %v55_v8, 7  ;;  %s5068_s1 = smov 88   ;;  %s5071_s30 = smov 80   ;;  %vm1863_vm6 = vcmask 195584  }
   0x3   :  { %4579 = vmatprep.mubr.msk.f32.mxu1 %vm187_vm1, %v180_v1  ;;  %v53_v3 = vld [vmem:[%s5840_s3] sm:$0xff]  ;;  %4578 = vmatpush3.msk.msra.mxu1 %vm194_vm0, %v182_v0  ;;  %v52_v7 = vld [vmem:[%s5841_s0 + $0x8] sm:$0xff]  ;;  %s5070_s3 = smov 56   ;;  %s5073_s16 = smov 48   ;;  %vm4225_vm8 = vcmask 254976   ;;  %vm4331_vm9 = vcmask 1024  }
   0x4   :  { %v51_v5 = vld [vmem:[%s5841_s0] sm:$0xff]  ;;  %v4859_v6 = vpack.c.bf16 %v54_v4, %v53_v3  ;;  %4580 = vmatmul.mubr.msk.f32.vlgmr.msra.gmra.mrb[0].mxu1 %vm187_vm1, %v181_v2  ;;  %v5187_v10 = vsub.s32 3, %v5184_v9  ;;  %v5197_v13 = vsub.s32 0, %v5184_v9  ;;  %v5210_v53 = vsub.s32 4, %v5184_v9  ;;  %s5062_s0 = smov 16   ;;  %s5074_s17 = smov 72  }
   0x5   :  { %4574 = vmatprep.mubr.msk.f32.mxu0 %vm59_vm2, %v51_v5  ;;  %v5192_v11 = vld [vmem:[%s5842_s5] sm:$0xff]  ;;  %v5213_v54 = vsub.s32 5, %v5184_v9  ;;  %s5072_s5 = smov 112   ;;  %s5075_s18 = smov 104  }
   0x6   :  { %4860 = vmatprep.subr.bf16.mxu0 %v4859_v6  ;;  %v186_v12 = vrot.slane %v5192_v11, %v5187_v10  ;;  %v58_v17 = vrot.slane %v5192_v11, %v5197_v13  ;;  %v302_v55 = vrot.slane %v5192_v11, %v5210_v53  ;;  %s5078_s28 = smov 24  }
   0x7   :  { %4862 = vmatpush3.bf16.msra.mxu0 %v4859_v6  ;;  %v308_v58 = vrot.slane %v5192_v11, %v5213_v54 }
   0xa   :  { %4575 = vmatmul.mubr.msk.f32.vlgmr.msra.gmra.mrb[0].mxu0 %vm59_vm2, %v52_v7  ;;  %v5222_v7 = vsub.s32 1, %v5184_v9 }
  0xd7   :  { %v4581_v14 = vpop.f32.mrb[0].mxu1 }
  0xd8   :  { %v264_v15 = vpop.f32.mrb[1].mxu1  ;;  %v270_v18 = vadd.f32 %v4581_v14, %v186_v12 }
  0xd9   :  { %v265_v16 = vadd.f32 %v264_v15, %v186_v12  ;;  %v171_v15 = vrot.slane %v5192_v11, %v5222_v7 }
  0xda   :  { %v276_v24 = vsel %vm59_vm2, %v270_v18, 0.0 }
  0xdb   :  { %v273_v19 = vsel %vm59_vm2, %v265_v16, 0.0 }
  0xdc   :  { %274 = vadd.xlane.f32.xlu0 %v273_v19 }
  0xdd   :  { %v4576_v20 = vpop.f32.mrb[0].mxu0 }
  0xde   :  { %v132_v21 = vpop.f32.mrb[1].mxu0  ;;  %v138_v22 = vadd.f32 %v4576_v20, %v58_v17 }
  0xdf   :  { %v133_v23 = vadd.f32 %v132_v21, %v58_v17  ;;  %v321_v21 = vld [vmem:[%s5843_s7] sm:$0xf]  ;;  %s5077_s7 = smov 8  }
  0xe0   :  { %277 = vadd.xlane.f32.xlu0 %v276_v24  ;;  %v144_v26 = vsel %vm59_vm2, %v138_v22, 0.0 }
  0xe1   :  { %v141_v25 = vsel %vm59_vm2, %v133_v23, 0.0 }
  0xe2   :  { %142 = vadd.xlane.f32.xlu1 %v141_v25 }
  0xe6   :  { %145 = vadd.xlane.f32.xlu1 %v144_v26  ;;  %v328_v26 = vrot.slane %v321_v21, %v5197_v13 }
 0x169   :  { %v275_v27 = vpop.xlane.xlu0 %274 }
 0x16a   :  { %v279_v28 = vmul.f32 0.0625, %v275_v27 }
 0x16c   :  { %v281_v29 = vsub.f32 %v265_v16, %v279_v28  ;;  %v5227_v16 = vsub.s32 2, %v5184_v9 }
 0x16d   :  { %v278_v30 = vpop.xlane.xlu0 %277 }
 0x16e   :  { %v280_v31 = vmul.f32 0.0625, %v278_v30  ;;  %v283_v33 = vmul.f32 %v281_v29, %v281_v29  ;;  %v177_v19 = vrot.slane %v5192_v11, %v5227_v16 }
 0x16f   :  { %v143_v32 = vpop.xlane.xlu1 %142 }
 0x170   :  { %v148_v34 = vmul.f32 0.0625, %v143_v32  ;;  %v282_v35 = vsub.f32 %v270_v18, %v280_v31  ;;  %v285_v36 = vsel %vm59_vm2, %v283_v33, 0.0 }
 0x171   :  { %286 = vadd.xlane.f32.xlu0 %v285_v36 }
 0x172   :  { %v150_v37 = vsub.f32 %v133_v23, %v148_v34  ;;  %v284_v39 = vmul.f32 %v282_v35, %v282_v35  ;;  %v322_v23 = vld [vmem:[%s5844_s6] sm:$0xff]  ;;  %s5076_s6 = smov 40  }
 0x173   :  { %v146_v38 = vpop.xlane.xlu1 %145 }
 0x174   :  { %v149_v40 = vmul.f32 0.0625, %v146_v38  ;;  %v152_v41 = vmul.f32 %v150_v37, %v150_v37  ;;  %v288_v42 = vsel %vm59_vm2, %v284_v39, 0.0 }
 0x175   :  { %289 = vadd.xlane.f32.xlu1 %v288_v42 }
 0x176   :  { %v151_v43 = vsub.f32 %v138_v22, %v149_v40  ;;  %v154_v44 = vsel %vm59_vm2, %v152_v41, 0.0 }
 0x177   :  { %155 = vadd.xlane.f32.xlu0 %v154_v44 }
 0x178   :  { %v153_v45 = vmul.f32 %v151_v43, %v151_v43 }
 0x17a   :  { %v157_v46 = vsel %vm59_vm2, %v153_v45, 0.0 }
 0x17b   :  { %158 = vadd.xlane.f32.xlu1 %v157_v46  ;;  %v375_v46 = vld [vmem:[%s5845_s8] sm:$0xff] }
 0x1fe   :  { %v287_v47 = vpop.xlane.xlu0 %286 }
 0x1ff   :  { %v291_v48 = vmul.f32 0.0625, %v287_v47  ;;  %v376_v47 = vld [vmem:[%s5845_s8 + $0x8] sm:$0xff] }
 0x201   :  { %v293_v49 = vadd.f32 1e-12, %v291_v48  ;;  %v4863_v48 = vpack.c.bf16 %v376_v47, %v375_v46 }
 0x202   :  { %v290_v50 = vpop.xlane.xlu1 %289 }
 0x203   :  { %4960 = vrsqrt.f32 %v293_v49  ;;  %v292_v51 = vmul.f32 0.0625, %v290_v50  ;;  %4864 = vmatprep.subr.bf16.mxu1 %v4863_v48  ;;  %v377_v49 = vld [vmem:[%s5845_s8 + $0x10] sm:$0xff]  ;;  %v378_v50 = vld [vmem:[%s5845_s8 + $0x18] sm:$0xff] }
 0x204   :  { %v156_v1 = vpop.xlane.xlu0 %155  ;;  %4866 = vmatpush3.bf16.msra.mxu1 %v4863_v48 }
 0x205   :  { %v294_v52 = vadd.f32 1e-12, %v292_v51  ;;  %v160_v2 = vmul.f32 0.0625, %v156_v1  ;;  %v4867_v51 = vpack.c.bf16 %v378_v50, %v377_v49 }
 0x207   :  { %4962 = vrsqrt.f32 %v294_v52  ;;  %v162_v4 = vadd.f32 1e-12, %v160_v2  ;;  %4868 = vmatprep.subr.bf16.mxu1 %v4867_v51 }
 0x208   :  { %v159_v3 = vpop.xlane.xlu1 %158  ;;  %4870 = vmatpush3.bf16.msra.mxu1 %v4867_v51 }
 0x209   :  { %v161_v5 = vmul.f32 0.0625, %v159_v3  ;;  %4964 = vrsqrt.f32 %v162_v4 }
 0x20b   :  { %v163_v6 = vadd.f32 1e-12, %v161_v5 }
 0x20d   :  { %v4961_v56 = vpop.eup %4960  ;;  %4966 = vrsqrt.f32 %v163_v6  ;;  %v5063_v6 = vmov 0.0  }
 0x20e   :  { %v297_v57 = vmul.f32 %v4961_v56, %v281_v29  ;;  %4593 = vmatprep.subr.mxu0 %v5063_v6  ;;  %4603 = vmatprep.subr.mxu1 %v5063_v6 }
 0x20f   :  { %4595 = vmatprep.mubr.msk.f32.mxu0 %vm5064_vm4, %v5063_v6 }
 0x210   :  { %v303_v59 = vmul.f32 %v302_v55, %v297_v57 }
 0x211   :  { %v4963_v60 = vpop.eup %4962 }
 0x212   :  { %v309_v61 = vadd.f32 %v308_v58, %v303_v59  ;;  %v298_v62 = vmul.f32 %v4963_v60, %v282_v35  ;;  %v362_v60 = vrot.slane %v321_v21, %v5222_v7 }
 0x213   :  { %v4965_v12 = vpop.eup %4964 }
 0x214   :  { %313 = vrot.lane.b32.xlu0 %v309_v61, %s5062_s0  ;;  %v304_v63 = vmul.f32 %v302_v55, %v298_v62  ;;  %v166_v14 = vmul.f32 %v4965_v12, %v150_v37  ;;  %v368_v62 = vrot.slane %v321_v21, %v5227_v16  ;;  %v4342_v12 = vld [vmem:[%s5846_s10] ss:$0 sm:$0xff]  ;;  %v5066_v21 = vmov 1966171168  }
 0x216   :  { %v310_v0 = vadd.f32 %v308_v58, %v304_v63  ;;  %v172_v18 = vmul.f32 %v171_v15, %v166_v14 }
 0x217   :  { %v4967_v17 = vpop.eup %4966 }
 0x218   :  { %315 = vrot.lane.b32.xlu1 %v310_v0, %s5062_s0  ;;  %v167_v20 = vmul.f32 %v4967_v17, %v151_v43  ;;  %v178_v22 = vadd.f32 %v177_v19, %v172_v18 }
 0x21a   :  { %v173_v24 = vmul.f32 %v171_v15, %v167_v20 }
 0x21c   :  { %v179_v29 = vadd.f32 %v177_v19, %v173_v24 }
 0x286   :  { %v314_v25 = vpop.permute.xlu0 %313 }
 0x287   :  { %v319_v27 = vsel %vm59_vm2, %v178_v22, %v314_v25  ;;  %v626_v22 = vunpack.c.l.s4 %v5066_v21 }
 0x288   :  { %v323_v28 = vadd.f32 %v322_v23, %v319_v27 }
 0x289   :  { %v627_v25 = vunpack.c.0.s8 %v626_v22 }
 0x28a   :  { %v316_v11 = vpop.permute.xlu1 %315  ;;  %v329_v30 = vadd.f32 %v328_v26, %v323_v28 }
 0x28b   :  { %v320_v31 = vsel %vm59_vm2, %v179_v29, %v316_v11  ;;  %v630_v27 = vsub.s32 %v627_v25, %v5184_v9 }
 0x28c   :  { %v324_v32 = vadd.f32 %v322_v23, %v320_v31  ;;  %v332_v33 = vsel %vm331_vm3, %v329_v30, 0.0  ;;  %v371_v23 = vld [vmem:[%s5847_s2] sm:$0x3]  ;;  %s5067_s2 = smov 64  }
 0x28d   :  { %333 = vadd.xlane.f32.xlu1 %v332_v33  ;;  %v372_v24 = vsub.f32 1.0, %v371_v23 }
 0x28e   :  { %v330_v34 = vadd.f32 %v328_v26, %v324_v32 }
 0x28f   :  { %v373_v26 = vmul.f32 -10000.0, %v372_v24 }
 0x290   :  { %v335_v35 = vsel %vm331_vm3, %v330_v34, 0.0 }
 0x291   :  { %336 = vadd.xlane.f32.xlu0 %v335_v35  ;;  %v631_v28 = vrot.slane %v373_v26, %v630_v27 }
 0x293   :  { %v639_v29 = vrot.slane %v631_v28, %v630_v27  ;;  %v632_v11 = vcombine.high %v631_v28, %v631_v28 }
 0x295   :  { %v646_v31 = vrot.slane %v632_v11, %v630_v27 }
 0x31a   :  { %v334_v36 = vpop.xlane.xlu1 %333 }
 0x31b   :  { %v339_v37 = vmul.f32 0.03125, %v334_v36  ;;  %v5304_v36 = vrot.slane %v646_v31, %v5197_v13 }
 0x31d   :  { %v341_v38 = vsub.f32 %v329_v30, %v339_v37  ;;  %v5300_v30 = vrot.slane %v639_v29, %v5197_v13 }
 0x31e   :  { %v337_v39 = vpop.xlane.xlu0 %336 }
 0x31f   :  { %v340_v40 = vmul.f32 0.03125, %v337_v39  ;;  %v343_v41 = vmul.f32 %v341_v38, %v341_v38 }
 0x321   :  { %v342_v42 = vsub.f32 %v330_v34, %v340_v40  ;;  %v345_v43 = vsel %vm331_vm3, %v343_v41, 0.0 }
 0x322   :  { %346 = vadd.xlane.f32.xlu0 %v345_v43 }
 0x323   :  { %v344_v44 = vmul.f32 %v342_v42, %v342_v42 }
 0x325   :  { %v348_v45 = vsel %vm331_vm3, %v344_v44, 0.0 }
 0x326   :  { %349 = vadd.xlane.f32.xlu1 %v348_v45 }
 0x3af   :  { %v347_v52 = vpop.xlane.xlu0 %346 }
 0x3b0   :  { %v351_v55 = vmul.f32 0.03125, %v347_v52 }
 0x3b2   :  { %v353_v56 = vadd.f32 1e-12, %v351_v55 }
 0x3b3   :  { %v350_v57 = vpop.xlane.xlu1 %349 }
 0x3b4   :  { %4968 = vrsqrt.f32 %v353_v56  ;;  %v352_v58 = vmul.f32 0.03125, %v350_v57 }
 0x3b6   :  { %v354_v59 = vadd.f32 1e-12, %v352_v58 }
 0x3b8   :  { %4970 = vrsqrt.f32 %v354_v59 }
 0x3be   :  { %v4969_v61 = vpop.eup %4968 }
 0x3bf   :  { %v357_v63 = vmul.f32 %v4969_v61, %v341_v38 }
 0x3c1   :  { %v363_v0 = vmul.f32 %v362_v60, %v357_v63 }
 0x3c2   :  { %v4971_v1 = vpop.eup %4970 }
 0x3c3   :  { %v358_v2 = vmul.f32 %v4971_v1, %v342_v42  ;;  %v5258_v3 = vadd.f32 %v368_v62, %v363_v0 }
 0x3c5   :  { %4590 = vmatprep.mubr.msk.f32.mxu1 %vm331_vm3, %v5258_v3  ;;  %v364_v4 = vmul.f32 %v362_v60, %v358_v2 }
 0x3c7   :  { %v5262_v5 = vadd.f32 %v368_v62, %v364_v4 }
 0x3c9   :  { %4591 = vmatmul.mubr.msk.f32.vlgmr.msra.gmra.mrb[2].mxu1 %vm331_vm3, %v5262_v5 }
 0x3ca   :  { %4605 = vmatprep.mubr.msk.f32.mxu1 %vm5064_vm4, %v5063_v6 }
 0x49c   :  { %v4592_v14 = vpop.f32.mrb[2].mxu1 }
 0x49d   :  { %v5275_v15 = vadd.f32 %v4592_v14, %v4342_v12  ;;  %v458_v17 = vpop.f32.mrb[3].mxu1 }
 0x49e   :  { %v5277_v18 = vadd.f32 %v4342_v12, %v458_v17 }
 0x49f   :  { %546 = vrot.lane.b32.xlu1 %v5275_v15, %s5065_s27 }
 0x4a0   :  { %468 = vrot.lane.b32.xlu0 %v5277_v18, %s5065_s27 }
 0x511   :  { %v547_v20 = vpop.permute.xlu1 %546 }
 0x512   :  { %v469_v19 = vpop.permute.xlu0 %468 }
 0x513   :  { %4594 = vmatpush3.xpose.msk.msra.mxu0 %vm470_vm5, %v469_v19 }
 0x514   :  { %4598 = vmatprep.subr.mxu0 %v5063_v6 }
 0x516   :  { %4596 = vmatmul.mubr.msk.f32.vlgmr.msra.gmra.mrb[2].mxu0 %vm470_vm5, %v5277_v18 }
 0x517   :  { %4599 = vmatpush3.xpose.msk.msra.mxu0 %vm470_vm5, %v547_v20  ;;  %4600 = vmatprep.mubr.msk.f32.mxu0 %vm5064_vm4, %v5063_v6 }
 0x518   :  { %4608 = vmatprep.subr.mxu0 %v5063_v6 }
 0x51a   :  { %4601 = vmatmul.mubr.msk.f32.vlgmr.msra.gmra.mrb[4].mxu0 %vm470_vm5, %v5275_v15 }
 0x51b   :  { %4610 = vmatprep.mubr.msk.f32.mxu0 %vm5064_vm4, %v5063_v6 }
 0x5e9   :  { %v541_v32 = vpop.f32.mrb[2].mxu0 }
 0x5ea   :  { %v622_v33 = vmul.f32 0.35355338, %v541_v32  ;;  %v4597_v34 = vpop.f32.mrb[3].mxu0 }
 0x5ec   :  { %v657_v35 = vadd.f32 %v5300_v30, %v622_v33 }
 0x5ed   :  { %v618_v37 = vpop.f32.mrb[4].mxu0 }
 0x5ee   :  { %v623_v38 = vmul.f32 0.35355338, %v618_v37  ;;  %v4602_v39 = vpop.f32.mrb[5].mxu0  ;;  %v659_v40 = vsel %vm470_vm5, %v657_v35, -inf }
 0x5ef   :  { %660 = vmax.xlane.f32.xlu1 %v659_v40 }
 0x5f0   :  { %v658_v41 = vadd.f32 %v5304_v36, %v623_v38 }
 0x5f2   :  { %v662_v42 = vsel %vm470_vm5, %v658_v41, -inf }
 0x5f3   :  { %663 = vmax.xlane.f32.xlu0 %v662_v42 }
 0x600   :  { %757 = vrot.lane.b32.xlu1 %v5275_v15, %s5067_s2 }
 0x604   :  { %835 = vrot.lane.b32.xlu1 %v5277_v18, %s5068_s1 }
 0x608   :  { %913 = vrot.lane.b32.xlu1 %v5275_v15, %s5068_s1 }
 0x609   :  { %681 = vrot.lane.b32.xlu0 %v5277_v18, %s5067_s2 }
 0x67c   :  { %v661_v43 = vpop.xlane.xlu1 %660 }
 0x67d   :  { %v665_v44 = vsub.f32 %v657_v35, %v661_v43 }
 0x67f   :  { %v667_v45 = vmul.f32 1.442695, %v665_v44 }
 0x680   :  { %v758_v46 = vpop.permute.xlu1 %757  ;;  %v664_v47 = vpop.xlane.xlu0 %663 }
 0x681   :  { %4972 = vpow2.f32 %v667_v45  ;;  %v666_v48 = vsub.f32 %v658_v41, %v664_v47  ;;  %4609 = vmatpush3.msra.mxu0 %v758_v46 }
 0x682   :  { %4618 = vmatprep.subr.mxu0 %v5063_v6 }
 0x683   :  { %v669_v49 = vmul.f32 1.442695, %v666_v48 }
 0x684   :  { %v682_v50 = vpop.permute.xlu0 %681  ;;  %v836_v57 = vpop.permute.xlu1 %835 }
 0x685   :  { %4974 = vpow2.f32 %v669_v49  ;;  %4604 = vmatpush3.msra.mxu1 %v682_v50 }
 0x686   :  { %4613 = vmatprep.subr.mxu1 %v5063_v6 }
 0x688   :  { %v914_v58 = vpop.permute.xlu1 %913 }
 0x68b   :  { %v4973_v51 = vpop.eup %4972 }
 0x68c   :  { %v671_v52 = vsel %vm470_vm5, %v4973_v51, 0.0 }
 0x68d   :  { %672 = vadd.xlane.f32.xlu0 %v671_v52 }
 0x68f   :  { %v4975_v55 = vpop.eup %4974 }
 0x690   :  { %v674_v56 = vsel %vm470_vm5, %v4975_v55, 0.0 }
 0x691   :  { %675 = vadd.xlane.f32.xlu1 %v674_v56 }
 0x6a2   :  { %911 = vrot.lane.b32.xlu1 %v5275_v15, %s5069_s29 }
 0x6a3   :  { %833 = vrot.lane.b32.xlu0 %v5277_v18, %s5069_s29 }
 0x71a   :  { %v673_v59 = vpop.xlane.xlu0 %672 }
 0x71b   :  { %4976 = vrcp.f32 %v673_v59 }
 0x71e   :  { %v676_v60 = vpop.xlane.xlu1 %675  ;;  %v834_v1 = vpop.permute.xlu0 %833 }
 0x71f   :  { %4978 = vrcp.f32 %v676_v60 }
 0x722   :  { %v912_v2 = vpop.permute.xlu1 %911 }
 0x725   :  { %v4977_v61 = vpop.eup %4976 }
 0x726   :  { %v679_v62 = vmul.f32 %v4977_v61, %v4973_v51 }
 0x728   :  { %4606 = vmatmul.mubr.msk.f32.vlgmr.msra.gmra.mrb[4].mxu1 %vm470_vm5, %v679_v62 }
 0x729   :  { %v4979_v63 = vpop.eup %4978  ;;  %4614 = vmatpush3.xpose.msk.msra.mxu1 %vm470_vm5, %v836_v57  ;;  %4615 = vmatprep.mubr.msk.f32.mxu1 %vm5064_vm4, %v5063_v6 }
 0x72a   :  { %v680_v0 = vmul.f32 %v4979_v63, %v4975_v55  ;;  %4623 = vmatprep.subr.mxu1 %v5063_v6 }
 0x72c   :  { %4611 = vmatmul.mubr.msk.f32.vlgmr.msra.gmra.mrb[6].mxu0 %vm470_vm5, %v680_v0  ;;  %4616 = vmatmul.mubr.msk.f32.vlgmr.msra.gmra.mrb[6].mxu1 %vm470_vm5, %v834_v1 }
 0x72d   :  { %4619 = vmatpush3.xpose.msk.msra.mxu0 %vm470_vm5, %v914_v58  ;;  %4620 = vmatprep.mubr.msk.f32.mxu0 %vm5064_vm4, %v5063_v6 }
 0x72e   :  { %4628 = vmatprep.subr.mxu0 %v5063_v6  ;;  %4625 = vmatprep.mubr.msk.f32.mxu1 %vm5064_vm4, %v5063_v6 }
 0x730   :  { %4621 = vmatmul.mubr.msk.f32.vlgmr.msra.gmra.mrb[8].mxu0 %vm470_vm5, %v912_v2 }
 0x731   :  { %4630 = vmatprep.mubr.msk.f32.mxu0 %vm5064_vm4, %v5063_v6 }
 0x7fb   :  { %v5341_v4 = vpop.f32.mrb[4].mxu1 }
 0x7fc   :  { %v4607_v12 = vpop.f32.mrb[5].mxu1 }
 0x7ff   :  { %v5343_v14 = vpop.f32.mrb[6].mxu0  ;;  %v907_v17 = vpop.f32.mrb[6].mxu1 }
 0x800   :  { %v989_v19 = vmul.f32 0.35355338, %v907_v17  ;;  %v4612_v20 = vpop.f32.mrb[7].mxu0  ;;  %v4617_v21 = vpop.f32.mrb[7].mxu1 }
 0x802   :  { %v991_v22 = vadd.f32 %v989_v19, %v5300_v30 }
 0x803   :  { %v985_v23 = vpop.f32.mrb[8].mxu0 }
 0x804   :  { %v990_v24 = vmul.f32 0.35355338, %v985_v23  ;;  %v4622_v25 = vpop.f32.mrb[9].mxu0  ;;  %v993_v26 = vsel %vm470_vm5, %v991_v22, -inf }
 0x805   :  { %994 = vmax.xlane.f32.xlu0 %v993_v26 }
 0x806   :  { %v992_v27 = vadd.f32 %v990_v24, %v5304_v36 }
 0x808   :  { %v996_v28 = vsel %vm470_vm5, %v992_v27, -inf }
 0x809   :  { %997 = vmax.xlane.f32.xlu1 %v996_v28 }
 0x81a   :  { %1091 = vrot.lane.b32.xlu1 %v5275_v15, %s5070_s3 }
 0x81b   :  { %1015 = vrot.lane.b32.xlu0 %v5277_v18, %s5070_s3 }
 0x81e   :  { %1169 = vrot.lane.b32.xlu1 %v5277_v18, %s5071_s30 }
 0x822   :  { %1247 = vrot.lane.b32.xlu1 %v5275_v15, %s5071_s30 }
 0x826   :  { %1245 = vrot.lane.b32.xlu1 %v5275_v15, %s5072_s5 }
 0x892   :  { %v995_v29 = vpop.xlane.xlu0 %994 }
 0x893   :  { %v999_v11 = vsub.f32 %v991_v22, %v995_v29 }
 0x895   :  { %v1001_v31 = vmul.f32 1.442695, %v999_v11 }
 0x896   :  { %v1016_v32 = vpop.permute.xlu0 %1015  ;;  %v998_v33 = vpop.xlane.xlu1 %997 }
 0x897   :  { %4980 = vpow2.f32 %v1001_v31  ;;  %v1000_v34 = vsub.f32 %v992_v27, %v998_v33  ;;  %4624 = vmatpush3.msra.mxu1 %v1016_v32 }
 0x898   :  { %4633 = vmatprep.subr.mxu1 %v5063_v6 }
 0x899   :  { %v1003_v35 = vmul.f32 1.442695, %v1000_v34 }
 0x89a   :  { %v1092_v37 = vpop.permute.xlu1 %1091 }
 0x89b   :  { %4982 = vpow2.f32 %v1003_v35  ;;  %4629 = vmatpush3.msra.mxu0 %v1092_v37 }
 0x89c   :  { %4638 = vmatprep.subr.mxu0 %v5063_v6 }
 0x89e   :  { %v1170_v44 = vpop.permute.xlu1 %1169 }
 0x8a1   :  { %v4981_v38 = vpop.eup %4980 }
 0x8a2   :  { %v1005_v39 = vsel %vm470_vm5, %v4981_v38, 0.0  ;;  %v1248_v48 = vpop.permute.xlu1 %1247 }
 0x8a3   :  { %1006 = vadd.xlane.f32.xlu0 %v1005_v39 }
 0x8a5   :  { %v4983_v40 = vpop.eup %4982 }
 0x8a6   :  { %v1008_v41 = vsel %vm470_vm5, %v4983_v40, 0.0  ;;  %v1246_v51 = vpop.permute.xlu1 %1245 }
 0x8a7   :  { %1009 = vadd.xlane.f32.xlu0 %v1008_v41 }
 0x8bd   :  { %1167 = vrot.lane.b32.xlu0 %v5277_v18, %s5072_s5 }
 0x930   :  { %v1007_v42 = vpop.xlane.xlu0 %1006 }
 0x931   :  { %4984 = vrcp.f32 %v1007_v42 }
 0x934   :  { %v1010_v43 = vpop.xlane.xlu0 %1009 }
 0x935   :  { %4986 = vrcp.f32 %v1010_v43 }
 0x938   :  { %v1168_v50 = vpop.permute.xlu0 %1167 }
 0x93b   :  { %v4985_v45 = vpop.eup %4984 }
 0x93c   :  { %v1013_v46 = vmul.f32 %v4985_v45, %v4981_v38 }
 0x93e   :  { %4626 = vmatmul.mubr.msk.f32.vlgmr.msra.gmra.mrb[8].mxu1 %vm470_vm5, %v1013_v46 }
 0x93f   :  { %v4987_v47 = vpop.eup %4986  ;;  %4634 = vmatpush3.xpose.msk.msra.mxu1 %vm470_vm5, %v1170_v44  ;;  %4635 = vmatprep.mubr.msk.f32.mxu1 %vm5064_vm4, %v5063_v6 }
 0x940   :  { %v1014_v49 = vmul.f32 %v4987_v47, %v4983_v40  ;;  %4643 = vmatprep.subr.mxu1 %v5063_v6 }
 0x942   :  { %4631 = vmatmul.mubr.msk.f32.vlgmr.msra.gmra.mrb[10].mxu0 %vm470_vm5, %v1014_v49  ;;  %4636 = vmatmul.mubr.msk.f32.vlgmr.msra.gmra.mrb[10].mxu1 %vm470_vm5, %v1168_v50 }
 0x943   :  { %4639 = vmatpush3.xpose.msk.msra.mxu0 %vm470_vm5, %v1248_v48  ;;  %4640 = vmatprep.mubr.msk.f32.mxu0 %vm5064_vm4, %v5063_v6 }
 0x944   :  { %4648 = vmatprep.subr.mxu0 %v5063_v6  ;;  %4645 = vmatprep.mubr.msk.f32.mxu1 %vm5064_vm4, %v5063_v6 }
 0x946   :  { %4641 = vmatmul.mubr.msk.f32.vlgmr.msra.gmra.mrb[12].mxu0 %vm470_vm5, %v1246_v51 }
 0x947   :  { %4650 = vmatprep.mubr.msk.f32.mxu0 %vm5064_vm4, %v5063_v6 }
 0xa11   :  { %v5381_v52 = vpop.f32.mrb[8].mxu1 }
 0xa12   :  { %v4627_v55 = vpop.f32.mrb[9].mxu1 }
 0xa15   :  { %v5383_v56 = vpop.f32.mrb[10].mxu0  ;;  %v1241_v57 = vpop.f32.mrb[10].mxu1 }
 0xa16   :  { %v1323_v58 = vmul.f32 0.35355338, %v1241_v57  ;;  %v4632_v59 = vpop.f32.mrb[11].mxu0  ;;  %v4637_v60 = vpop.f32.mrb[11].mxu1 }
 0xa18   :  { %v1325_v61 = vadd.f32 %v1323_v58, %v5300_v30 }
 0xa19   :  { %v1319_v62 = vpop.f32.mrb[12].mxu0 }
 0xa1a   :  { %v1324_v63 = vmul.f32 0.35355338, %v1319_v62  ;;  %v4642_v0 = vpop.f32.mrb[13].mxu0  ;;  %v1327_v1 = vsel %vm470_vm5, %v1325_v61, -inf }
 0xa1b   :  { %1328 = vmax.xlane.f32.xlu0 %v1327_v1 }
 0xa1c   :  { %v1326_v2 = vadd.f32 %v1324_v63, %v5304_v36 }
 0xa1e   :  { %v1330_v12 = vsel %vm470_vm5, %v1326_v2, -inf }
 0xa1f   :  { %1331 = vmax.xlane.f32.xlu1 %v1330_v12 }
 0xa30   :  { %1425 = vrot.lane.b32.xlu1 %v5275_v15, %s5073_s16 }
 0xa31   :  { %1349 = vrot.lane.b32.xlu0 %v5277_v18, %s5073_s16 }
 0xa34   :  { %1503 = vrot.lane.b32.xlu1 %v5277_v18, %s5074_s17 }
 0xa38   :  { %1581 = vrot.lane.b32.xlu1 %v5275_v15, %s5074_s17 }
 0xa3c   :  { %1579 = vrot.lane.b32.xlu1 %v5275_v15, %s5075_s18 }
 0xaa8   :  { %v1329_v17 = vpop.xlane.xlu0 %1328 }
 0xaa9   :  { %v1333_v19 = vsub.f32 %v1325_v61, %v1329_v17 }
 0xaab   :  { %v1335_v20 = vmul.f32 1.442695, %v1333_v19 }
 0xaac   :  { %v1350_v21 = vpop.permute.xlu0 %1349  ;;  %v1332_v22 = vpop.xlane.xlu1 %1331 }
 0xaad   :  { %4988 = vpow2.f32 %v1335_v20  ;;  %v1334_v23 = vsub.f32 %v1326_v2, %v1332_v22  ;;  %4644 = vmatpush3.msra.mxu1 %v1350_v21 }
 0xaae   :  { %4653 = vmatprep.subr.mxu1 %v5063_v6 }
 0xaaf   :  { %v1337_v24 = vmul.f32 1.442695, %v1334_v23 }
 0xab0   :  { %v1426_v25 = vpop.permute.xlu1 %1425 }
 0xab1   :  { %4990 = vpow2.f32 %v1337_v24  ;;  %4649 = vmatpush3.msra.mxu0 %v1426_v25  ;;  %v1867_v24 = vld [vmem:[%s5848_s9 + $0x8] sm:$0xff] }
 0xab2   :  { %4658 = vmatprep.subr.mxu0 %v5063_v6 }
 0xab4   :  { %v1504_v32 = vpop.permute.xlu1 %1503 }
 0xab7   :  { %v4989_v26 = vpop.eup %4988 }
 0xab8   :  { %v1339_v27 = vsel %vm470_vm5, %v4989_v26, 0.0  ;;  %v1582_v37 = vpop.permute.xlu1 %1581 }
 0xab9   :  { %1340 = vadd.xlane.f32.xlu0 %v1339_v27  ;;  %v1869_v27 = vld [vmem:[%s5848_s9 + $0x18] sm:$0xff] }
 0xabb   :  { %v4991_v28 = vpop.eup %4990 }
 0xabc   :  { %v1342_v29 = vsel %vm470_vm5, %v4991_v28, 0.0  ;;  %v1580_v40 = vpop.permute.xlu1 %1579 }
 0xabd   :  { %1343 = vadd.xlane.f32.xlu0 %v1342_v29 }
 0xad3   :  { %1501 = vrot.lane.b32.xlu0 %v5277_v18, %s5075_s18 }
 0xb46   :  { %v1341_v11 = vpop.xlane.xlu0 %1340 }
 0xb47   :  { %4992 = vrcp.f32 %v1341_v11 }
 0xb4a   :  { %v1344_v31 = vpop.xlane.xlu0 %1343 }
 0xb4b   :  { %4994 = vrcp.f32 %v1344_v31 }
 0xb4e   :  { %v1502_v39 = vpop.permute.xlu0 %1501 }
 0xb51   :  { %v4993_v33 = vpop.eup %4992 }
 0xb52   :  { %v1347_v34 = vmul.f32 %v4993_v33, %v4989_v26  ;;  %v1868_v26 = vld [vmem:[%s5848_s9 + $0x10] sm:$0xff] }
 0xb54   :  { %4646 = vmatmul.mubr.msk.f32.vlgmr.msra.gmra.mrb[12].mxu1 %vm470_vm5, %v1347_v34 }
 0xb55   :  { %v4995_v35 = vpop.eup %4994  ;;  %4654 = vmatpush3.xpose.msk.msra.mxu1 %vm470_vm5, %v1504_v32  ;;  %4655 = vmatprep.mubr.msk.f32.mxu1 %vm5064_vm4, %v5063_v6 }
 0xb56   :  { %v1348_v38 = vmul.f32 %v4995_v35, %v4991_v28  ;;  %4663 = vmatprep.subr.mxu1 %v5063_v6  ;;  %v4875_v28 = vpack.c.bf16 %v1869_v27, %v1868_v26 }
 0xb58   :  { %4651 = vmatmul.mubr.msk.f32.vlgmr.msra.gmra.mrb[14].mxu0 %vm470_vm5, %v1348_v38  ;;  %4656 = vmatmul.mubr.msk.f32.vlgmr.msra.gmra.mrb[14].mxu1 %vm470_vm5, %v1502_v39 }
 0xb59   :  { %4659 = vmatpush3.xpose.msk.msra.mxu0 %vm470_vm5, %v1582_v37  ;;  %4660 = vmatprep.mubr.msk.f32.mxu0 %vm5064_vm4, %v5063_v6 }
 0xb5a   :  { %4668 = vmatprep.subr.mxu0 %v5063_v6  ;;  %4665 = vmatprep.mubr.msk.f32.mxu1 %vm5064_vm4, %v5063_v6 }
 0xb5c   :  { %4661 = vmatmul.mubr.msk.f32.vlgmr.msra.gmra.mrb[16].mxu0 %vm470_vm5, %v1580_v40 }
 0xb5d   :  { %4670 = vmatprep.mubr.msk.f32.mxu0 %vm5064_vm4, %v5063_v6 }
 0xc27   :  { %v1421_v41 = vpop.f32.mrb[12].mxu1 }
 0xc28   :  { %v4647_v42 = vpop.f32.mrb[13].mxu1 }
 0xc2b   :  { %v1497_v43 = vpop.f32.mrb[14].mxu0  ;;  %v1575_v44 = vpop.f32.mrb[14].mxu1 }
 0xc2c   :  { %v1657_v45 = vmul.f32 0.35355338, %v1575_v44  ;;  %v4652_v46 = vpop.f32.mrb[15].mxu0  ;;  %v4657_v47 = vpop.f32.mrb[15].mxu1 }
 0xc2e   :  { %v1659_v48 = vadd.f32 %v1657_v45, %v5300_v30 }
 0xc2f   :  { %v1653_v49 = vpop.f32.mrb[16].mxu0 }
 0xc30   :  { %v1658_v50 = vmul.f32 0.35355338, %v1653_v49  ;;  %v4662_v51 = vpop.f32.mrb[17].mxu0  ;;  %v1661_v55 = vsel %vm470_vm5, %v1659_v48, -inf }
 0xc31   :  { %1662 = vmax.xlane.f32.xlu0 %v1661_v55 }
 0xc32   :  { %v1660_v57 = vadd.f32 %v1658_v50, %v5304_v36 }
 0xc34   :  { %v1664_v58 = vsel %vm470_vm5, %v1660_v57, -inf }
 0xc35   :  { %1665 = vmax.xlane.f32.xlu1 %v1664_v58 }
 0xc46   :  { %1759 = vrot.lane.b32.xlu1 %v5275_v15, %s5076_s6 }
 0xc4a   :  { %1837 = vrot.lane.b32.xlu1 %v5381_v52, %s5077_s7 }
 0xc4e   :  { %1839 = vrot.lane.b32.xlu1 %v5383_v56, %s5077_s7 }
 0xc52   :  { %1847 = vrot.lane.b32.xlu1 %v1497_v43, %s5062_s0 }
 0xcbe   :  { %v1663_v59 = vpop.xlane.xlu0 %1662 }
 0xcbf   :  { %v1667_v60 = vsub.f32 %v1659_v48, %v1663_v59 }
 0xcc1   :  { %v1669_v61 = vmul.f32 1.442695, %v1667_v60 }
 0xcc2   :  { %v1666_v62 = vpop.xlane.xlu1 %1665 }
 0xcc3   :  { %4996 = vpow2.f32 %v1669_v61  ;;  %v1668_v63 = vsub.f32 %v1660_v57, %v1666_v62 }
 0xcc5   :  { %v1671_v0 = vmul.f32 1.442695, %v1668_v63 }
 0xcc6   :  { %v1760_v1 = vpop.permute.xlu1 %1759 }
 0xcc7   :  { %4998 = vpow2.f32 %v1671_v0  ;;  %4669 = vmatpush3.msra.mxu0 %v1760_v1 }
 0xcca   :  { %v1838_v33 = vpop.permute.xlu1 %1837 }
 0xccb   :  { %v1859_v37 = vsel %vm470_vm5, %v5341_v4, %v1838_v33  ;;  %v5466_v4 = vld [vmem:[%s5849_s11] sm:$0xff] }
 0xccc   :  { %v1873_v46 = vrot.slane %v5466_v4, %v5197_v13  ;;  %v1992_v27 = vrot.slane %v5466_v4, %v5227_v16 }
 0xccd   :  { %v4997_v15 = vpop.eup %4996 }
 0xcce   :  { %v1673_v2 = vsel %vm470_vm5, %v4997_v15, 0.0  ;;  %v1840_v34 = vpop.permute.xlu1 %1839 }
 0xccf   :  { %1674 = vadd.xlane.f32.xlu0 %v1673_v2  ;;  %v1860_v42 = vsel %vm470_vm5, %v5343_v14, %v1840_v34  ;;  %v4372_v2 = vld [vmem:[%s5848_s9 + $0x28] sm:$0xff]  ;;  %v4377_v34 = vld [vmem:[%s5848_s9 + $0x40] sm:$0xff] }
 0xcd1   :  { %v4999_v52 = vpop.eup %4998 }
 0xcd2   :  { %v1676_v12 = vsel %vm470_vm5, %v4999_v52, 0.0  ;;  %v1848_v38 = vpop.permute.xlu1 %1847 }
 0xcd3   :  { %1677 = vadd.xlane.f32.xlu0 %v1676_v12  ;;  %v1862_v43 = vsel %vm59_vm2, %v1860_v42, %v1848_v38  ;;  %v4373_v12 = vld [vmem:[%s5848_s9 + $0x30] sm:$0xff] }
 0xce9   :  { %1683 = vrot.lane.b32.xlu0 %v5277_v18, %s5076_s6  ;;  %v1866_v18 = vld [vmem:[%s5848_s9] sm:$0xff] }
 0xcea   :  { %v4871_v25 = vpack.c.bf16 %v1867_v24, %v1866_v18  ;;  %v1986_v24 = vrot.slane %v5466_v4, %v5222_v7 }
 0xced   :  { %1845 = vrot.lane.b32.xlu0 %v1421_v41, %s5062_s0 }
 0xd5c   :  { %v1675_v56 = vpop.xlane.xlu0 %1674 }
 0xd5d   :  { %5000 = vrcp.f32 %v1675_v56  ;;  %v4374_v56 = vld [vmem:[%s5848_s9 + $0x38] sm:$0xff] }
 0xd60   :  { %v1678_v17 = vpop.xlane.xlu0 %1677 }
 0xd61   :  { %5002 = vrcp.f32 %v1678_v17  ;;  %v4883_v17 = vpack.c.bf16 %v4374_v56, %v4373_v12 }
 0xd64   :  { %v1684_v19 = vpop.permute.xlu0 %1683 }
 0xd65   :  { %4664 = vmatpush3.msra.mxu1 %v1684_v19 }
 0xd66   :  { %4872 = vmatprep.subr.bf16.mxu1 %v4871_v25 }
 0xd67   :  { %v5001_v20 = vpop.eup %5000 }
 0xd68   :  { %v1681_v21 = vmul.f32 %v5001_v20, %v4997_v15  ;;  %v1846_v35 = vpop.permute.xlu0 %1845 }
 0xd69   :  { %v1861_v39 = vsel %vm59_vm2, %v1859_v37, %v1846_v35  ;;  %v4378_v35 = vld [vmem:[%s5848_s9 + $0x48] sm:$0xff]  ;;  %v4379_v37 = vld [vmem:[%s5848_s9 + $0x50] sm:$0xff] }
 0xd6a   :  { %4666 = vmatmul.mubr.msk.f32.vlgmr.msra.gmra.mrb[16].mxu1 %vm470_vm5, %v1681_v21  ;;  %v4887_v38 = vpack.c.bf16 %v4378_v35, %v4377_v34  ;;  %v4387_v34 = vld [vmem:[%s5845_s8 + $0x38] sm:$0xff] }
 0xd6b   :  { %v5003_v22 = vpop.eup %5002  ;;  %4874 = vmatpush3.bf16.msra.mxu1 %v4871_v25 }
 0xd6c   :  { %v1682_v23 = vmul.f32 %v5003_v22, %v4999_v52  ;;  %4876 = vmatprep.subr.bf16.mxu1 %v4875_v28 }
 0xd6e   :  { %4671 = vmatmul.mubr.msk.f32.vlgmr.msra.gmra.mrb[18].mxu0 %vm470_vm5, %v1682_v23 }
 0xd6f   :  { %4878 = vmatpush3.bf16.msra.mxu1 %v4875_v28 }
 0xd70   :  { %4888 = vmatprep.subr.bf16.mxu1 %v4887_v38 }
 0xe3d   :  { %v1755_v29 = vpop.f32.mrb[16].mxu1 }
 0xe3e   :  { %1853 = vrot.lane.b32.xlu0 %v1755_v29, %s5078_s28  ;;  %v4667_v11 = vpop.f32.mrb[17].mxu1 }
 0xe41   :  { %v1831_v31 = vpop.f32.mrb[18].mxu0 }
 0xe42   :  { %1855 = vrot.lane.b32.xlu1 %v1831_v31, %s5078_s28  ;;  %v4672_v32 = vpop.f32.mrb[19].mxu0 }
 0xeb0   :  { %v1854_v40 = vpop.permute.xlu0 %1853 }
 0xeb1   :  { %v1864_v41 = vsel %vm1863_vm6, %v1861_v39, %v1854_v40  ;;  %v4380_v39 = vld [vmem:[%s5848_s9 + $0x58] sm:$0xff] }
 0xeb2   :  { %4681 = vmatprep.mubr.msk.f32.mxu1 %vm331_vm3, %v1864_v41  ;;  %v4891_v40 = vpack.c.bf16 %v4380_v39, %v4379_v37  ;;  %v2003_v41 = vrot.slane %v5466_v4, %v5187_v10 }
 0xeb4   :  { %v1856_v44 = vpop.permute.xlu1 %1855 }
 0xeb5   :  { %v1865_v45 = vsel %vm1863_vm6, %v1862_v43, %v1856_v44 }
 0xeb6   :  { %4682 = vmatmul.mubr.msk.f32.vlgmr.msra.gmra.mrb[18].mxu1 %vm331_vm3, %v1865_v45 }
 0xeb7   :  { %4890 = vmatpush3.bf16.msra.mxu1 %v4887_v38 }
 0xeb8   :  { %4892 = vmatprep.subr.bf16.mxu1 %v4891_v40 }
 0xebb   :  { %4894 = vmatpush3.bf16.msra.mxu1 %v4891_v40 }
 0xebc   :  { %4717 = vmatprep.subr.mxu1 %v5063_v6 }
 0xf89   :  { %v4683_v47 = vpop.f32.mrb[18].mxu1 }
 0xf8a   :  { %v1952_v48 = vadd.f32 %v4683_v47, %v1873_v46  ;;  %v1946_v49 = vpop.f32.mrb[19].mxu1 }
 0xf8b   :  { %v1947_v50 = vadd.f32 %v1946_v49, %v1873_v46 }
 0xf8c   :  { %v1956_v14 = vadd.f32 %v1952_v48, %v5262_v5 }
 0xf8d   :  { %v1955_v51 = vadd.f32 %v1947_v50, %v5258_v3  ;;  %v4371_v3 = vld [vmem:[%s5848_s9 + $0x20] sm:$0xff] }
 0xf8e   :  { %v1960_v55 = vsel %vm331_vm3, %v1956_v14, 0.0  ;;  %v4879_v52 = vpack.c.bf16 %v4372_v2, %v4371_v3 }
 0xf8f   :  { %1961 = vadd.xlane.f32.xlu1 %v1960_v55  ;;  %v1957_v57 = vsel %vm331_vm3, %v1955_v51, 0.0 }
 0xf90   :  { %1958 = vadd.xlane.f32.xlu0 %v1957_v57  ;;  %4880 = vmatprep.subr.bf16.mxu0 %v4879_v52 }
 0xf91   :  { %4882 = vmatpush3.bf16.msra.mxu0 %v4879_v52 }
 0xf92   :  { %4884 = vmatprep.subr.bf16.mxu0 %v4883_v17 }
 0xf95   :  { %4886 = vmatpush3.bf16.msra.mxu0 %v4883_v17 }
0x101c   :  { %v1962_v58 = vpop.xlane.xlu1 %1961 }
0x101d   :  { %v1964_v59 = vmul.f32 0.03125, %v1962_v58  ;;  %v1959_v60 = vpop.xlane.xlu0 %1958 }
0x101e   :  { %v1963_v61 = vmul.f32 0.03125, %v1959_v60 }
0x101f   :  { %v1966_v62 = vsub.f32 %v1956_v14, %v1964_v59 }
0x1020   :  { %v1965_v63 = vsub.f32 %v1955_v51, %v1963_v61 }
0x1021   :  { %v1968_v15 = vmul.f32 %v1966_v62, %v1966_v62 }
0x1022   :  { %v1967_v0 = vmul.f32 %v1965_v63, %v1965_v63 }
0x1023   :  { %v1972_v5 = vsel %vm331_vm3, %v1968_v15, 0.0 }
0x1024   :  { %v1969_v1 = vsel %vm331_vm3, %v1967_v0, 0.0 }
0x1025   :  { %1970 = vadd.xlane.f32.xlu0 %v1969_v1 }
0x1029   :  { %1973 = vadd.xlane.f32.xlu0 %v1972_v5  ;;  %v2111_v5 = vrot.slane %v5466_v4, %v5210_v53 }
0x10b2   :  { %v1971_v19 = vpop.xlane.xlu0 %1970 }
0x10b3   :  { %v1975_v20 = vmul.f32 0.03125, %v1971_v19 }
0x10b5   :  { %v1977_v21 = vadd.f32 1e-12, %v1975_v20 }
0x10b6   :  { %v1974_v22 = vpop.xlane.xlu0 %1973 }
0x10b7   :  { %5004 = vrsqrt.f32 %v1977_v21  ;;  %v1976_v23 = vmul.f32 0.03125, %v1974_v22 }
0x10b9   :  { %v1978_v18 = vadd.f32 1e-12, %v1976_v23 }
0x10bb   :  { %5006 = vrsqrt.f32 %v1978_v18 }
0x10c1   :  { %v5005_v25 = vpop.eup %5004 }
0x10c2   :  { %v1981_v26 = vmul.f32 %v5005_v25, %v1965_v63 }
0x10c4   :  { %v1987_v28 = vmul.f32 %v1986_v24, %v1981_v26 }
0x10c5   :  { %v5007_v29 = vpop.eup %5006 }
0x10c6   :  { %v1982_v11 = vmul.f32 %v5007_v29, %v1966_v62  ;;  %v1993_v31 = vadd.f32 %v1992_v27, %v1987_v28 }
0x10c8   :  { %v1988_v32 = vmul.f32 %v1986_v24, %v1982_v11  ;;  %4692 = vmatprep.mubr.msk.f32.mxu0 %vm331_vm3, %v1993_v31  ;;  %v4384_v11 = vld [vmem:[%s5845_s8 + $0x20] sm:$0xff] }
0x10ca   :  { %v1994_v33 = vadd.f32 %v1992_v27, %v1988_v32 }
0x10cc   :  { %4693 = vmatmul.mubr.msk.f32.vlgmr.msra.gmra.mrb[20].mxu0 %vm331_vm3, %v1994_v33 }
0x119f   :  { %v4694_v42 = vpop.f32.mrb[20].mxu0 }
0x11a0   :  { %v2082_v43 = vadd.f32 %v4694_v42, %v2003_v41  ;;  %v2076_v44 = vpop.f32.mrb[21].mxu0 }
0x11a1   :  { %v2077_v45 = vadd.f32 %v2076_v44, %v2003_v41  ;;  %v2224_v44 = vrot.slane %v5466_v4, %v5213_v54 }
0x11a2   :  { %v2088_v46 = vmul.f32 0.044715, %v2082_v43  ;;  %v2086_v0 = vmul.f32 0.5, %v2082_v43 }
0x11a3   :  { %v2087_v47 = vmul.f32 0.044715, %v2077_v45  ;;  %v2085_v62 = vmul.f32 0.5, %v2077_v45 }
0x11a4   :  { %v2090_v48 = vmul.f32 %v2088_v46, %v2082_v43 }
0x11a5   :  { %v2089_v49 = vmul.f32 %v2087_v47, %v2077_v45 }
0x11a6   :  { %v2092_v50 = vmul.f32 %v2090_v48, %v2082_v43 }
0x11a7   :  { %v2091_v14 = vmul.f32 %v2089_v49, %v2077_v45 }
0x11a8   :  { %v2094_v51 = vadd.f32 %v2092_v50, %v2082_v43  ;;  %v2229_v43 = vsub.s32 6, %v5184_v9 }
0x11a9   :  { %v2093_v55 = vadd.f32 %v2091_v14, %v2077_v45 }
0x11aa   :  { %v2096_v57 = vmul.f32 0.7978846, %v2094_v51  ;;  %v2230_v49 = vrot.slane %v5466_v4, %v2229_v43 }
0x11ab   :  { %v2095_v58 = vmul.f32 0.7978846, %v2093_v55 }
0x11ac   :  { %5008 = vtanh.f32 %v2096_v57  ;;  %v4389_v57 = vld [vmem:[%s5846_s10 + $0x1] ss:$0 sm:$0xff] }
0x11ad   :  { %5010 = vtanh.f32 %v2095_v58 }
0x11b6   :  { %v5009_v59 = vpop.eup %5008 }
0x11b7   :  { %v5011_v60 = vpop.eup %5010  ;;  %v2100_v61 = vadd.f32 1.0, %v5009_v59 }
0x11b8   :  { %v2099_v63 = vadd.f32 1.0, %v5011_v60 }
0x11b9   :  { %v2102_v15 = vmul.f32 %v2100_v61, %v2086_v0 }
0x11ba   :  { %v2101_v1 = vmul.f32 %v2099_v63, %v2085_v62 }
0x11bc   :  { %4703 = vmatprep.mubr.msk.f32.mxu1 %vm331_vm3, %v2101_v1 }
0x11bd   :  { %4704 = vmatmul.mubr.msk.f32.vlgmr.msra.gmra.mrb[20].mxu1 %vm331_vm3, %v2102_v15 }
0x11be   :  { %4719 = vmatprep.mubr.msk.f32.mxu1 %vm5064_vm4, %v5063_v6 }
0x1290   :  { %v4705_v3 = vpop.f32.mrb[20].mxu1 }
0x1291   :  { %v2190_v2 = vadd.f32 %v4705_v3, %v2111_v5  ;;  %v2184_v52 = vpop.f32.mrb[21].mxu1 }
0x1292   :  { %v2185_v12 = vadd.f32 %v2184_v52, %v2111_v5 }
0x1293   :  { %v2194_v56 = vadd.f32 %v2190_v2, %v1994_v33  ;;  %v4386_v33 = vld [vmem:[%s5845_s8 + $0x30] sm:$0xff] }
0x1294   :  { %v2193_v17 = vadd.f32 %v2185_v12, %v1993_v31  ;;  %v4385_v31 = vld [vmem:[%s5845_s8 + $0x28] sm:$0xff]  ;;  %v4899_v35 = vpack.c.bf16 %v4387_v34, %v4386_v33 }
0x1295   :  { %v2198_v19 = vsel %vm331_vm3, %v2194_v56, 0.0  ;;  %v4895_v32 = vpack.c.bf16 %v4385_v31, %v4384_v11 }
0x1296   :  { %2199 = vadd.xlane.f32.xlu1 %v2198_v19  ;;  %v2195_v20 = vsel %vm331_vm3, %v2193_v17, 0.0 }
0x1297   :  { %2196 = vadd.xlane.f32.xlu0 %v2195_v20  ;;  %4896 = vmatprep.subr.bf16.mxu0 %v4895_v32 }
0x1298   :  { %4898 = vmatpush3.bf16.msra.mxu0 %v4895_v32 }
0x1299   :  { %4900 = vmatprep.subr.bf16.mxu0 %v4899_v35 }
0x129c   :  { %4902 = vmatpush3.bf16.msra.mxu0 %v4899_v35 }
0x129d   :  { %4722 = vmatprep.subr.mxu0 %v5063_v6 }
0x1323   :  { %v2200_v21 = vpop.xlane.xlu1 %2199 }
0x1324   :  { %v2202_v22 = vmul.f32 0.03125, %v2200_v21  ;;  %v2197_v23 = vpop.xlane.xlu0 %2196 }
0x1325   :  { %v2201_v18 = vmul.f32 0.03125, %v2197_v23 }
0x1326   :  { %v2204_v24 = vsub.f32 %v2194_v56, %v2202_v22 }
0x1327   :  { %v2203_v25 = vsub.f32 %v2193_v17, %v2201_v18 }
0x1328   :  { %v2206_v26 = vmul.f32 %v2204_v24, %v2204_v24 }
0x1329   :  { %v2205_v27 = vmul.f32 %v2203_v25, %v2203_v25 }
0x132a   :  { %v2210_v28 = vsel %vm331_vm3, %v2206_v26, 0.0 }
0x132b   :  { %2211 = vadd.xlane.f32.xlu1 %v2210_v28  ;;  %v2207_v29 = vsel %vm331_vm3, %v2205_v27, 0.0 }
0x132c   :  { %2208 = vadd.xlane.f32.xlu0 %v2207_v29 }
0x13b8   :  { %v2212_v37 = vpop.xlane.xlu1 %2211 }
0x13b9   :  { %v2214_v38 = vmul.f32 0.03125, %v2212_v37  ;;  %v2209_v39 = vpop.xlane.xlu0 %2208 }
0x13ba   :  { %v2213_v40 = vmul.f32 0.03125, %v2209_v39 }
0x13bb   :  { %v2216_v41 = vadd.f32 1e-12, %v2214_v38 }
0x13bc   :  { %v2215_v42 = vadd.f32 1e-12, %v2213_v40 }
0x13bd   :  { %5012 = vrsqrt.f32 %v2216_v41 }
0x13be   :  { %5014 = vrsqrt.f32 %v2215_v42 }
0x13c7   :  { %v5013_v45 = vpop.eup %5012 }
0x13c8   :  { %v5015_v46 = vpop.eup %5014  ;;  %v2220_v47 = vmul.f32 %v5013_v45, %v2204_v24 }
0x13c9   :  { %v2219_v48 = vmul.f32 %v5015_v46, %v2203_v25 }
0x13ca   :  { %v2226_v50 = vmul.f32 %v2224_v44, %v2220_v47 }
0x13cb   :  { %v2225_v14 = vmul.f32 %v2224_v44, %v2219_v48 }
0x13cc   :  { %v5540_v55 = vadd.f32 %v2230_v49, %v2226_v50 }
0x13cd   :  { %v5538_v51 = vadd.f32 %v2230_v49, %v2225_v14 }
0x13cf   :  { %4714 = vmatprep.mubr.msk.f32.mxu0 %vm331_vm3, %v5538_v51 }
0x13d0   :  { %4715 = vmatmul.mubr.msk.f32.vlgmr.msra.gmra.mrb[22].mxu0 %vm331_vm3, %v5540_v55 }
0x13d1   :  { %4724 = vmatprep.mubr.msk.f32.mxu0 %vm5064_vm4, %v5063_v6 }
0x14a3   :  { %v4716_v4 = vpop.f32.mrb[22].mxu0 }
0x14a4   :  { %v5551_v58 = vadd.f32 %v4716_v4, %v4389_v57  ;;  %v2320_v59 = vpop.f32.mrb[23].mxu0 }
0x14a5   :  { %v5553_v60 = vadd.f32 %v4389_v57, %v2320_v59 }
0x14a6   :  { %2407 = vrot.lane.b32.xlu1 %v5551_v58, %s5065_s27 }
0x14a7   :  { %2330 = vrot.lane.b32.xlu0 %v5553_v60, %s5065_s27 }
0x1518   :  { %v2408_v61 = vpop.permute.xlu1 %2407 }
0x1519   :  { %4723 = vmatpush3.xpose.msk.msra.mxu0 %vm470_vm5, %v2408_v61  ;;  %v2331_v62 = vpop.permute.xlu0 %2330 }
0x151a   :  { %4718 = vmatpush3.xpose.msk.msra.mxu1 %vm470_vm5, %v2331_v62  ;;  %4732 = vmatprep.subr.mxu0 %v5063_v6 }
0x151b   :  { %4727 = vmatprep.subr.mxu1 %v5063_v6 }
0x151c   :  { %4725 = vmatmul.mubr.msk.f32.vlgmr.msra.gmra.mrb[24].mxu0 %vm470_vm5, %v5551_v58 }
0x151d   :  { %4720 = vmatmul.mubr.msk.f32.vlgmr.msra.gmra.mrb[22].mxu1 %vm470_vm5, %v5553_v60  ;;  %4734 = vmatprep.mubr.msk.f32.mxu0 %vm5064_vm4, %v5063_v6 }
0x151e   :  { %4729 = vmatprep.mubr.msk.f32.mxu1 %vm5064_vm4, %v5063_v6 }
0x15ef   :  { %v2479_v63 = vpop.f32.mrb[24].mxu0 }
0x15f0   :  { %v2484_v0 = vmul.f32 0.35355338, %v2479_v63  ;;  %v2402_v1 = vpop.f32.mrb[22].mxu1  ;;  %v4726_v15 = vpop.f32.mrb[25].mxu0 }
0x15f1   :  { %v2483_v5 = vmul.f32 0.35355338, %v2402_v1  ;;  %v4721_v3 = vpop.f32.mrb[23].mxu1 }
0x15f2   :  { %v2486_v2 = vadd.f32 %v2484_v0, %v5304_v36 }
0x15f3   :  { %v2485_v52 = vadd.f32 %v2483_v5, %v5300_v30 }
0x15f4   :  { %v2490_v12 = vsel %vm470_vm5, %v2486_v2, -inf }
0x15f5   :  { %2491 = vmax.xlane.f32.xlu0 %v2490_v12  ;;  %v2487_v56 = vsel %vm470_vm5, %v2485_v52, -inf }
0x15f6   :  { %2488 = vmax.xlane.f32.xlu1 %v2487_v56 }
0x1607   :  { %2585 = vrot.lane.b32.xlu1 %v5551_v58, %s5067_s2 }
0x160b   :  { %2509 = vrot.lane.b32.xlu0 %v5553_v60, %s5067_s2  ;;  %2663 = vrot.lane.b32.xlu1 %v5553_v60, %s5068_s1 }
0x160f   :  { %2741 = vrot.lane.b32.xlu1 %v5551_v58, %s5068_s1 }
0x1682   :  { %v2492_v17 = vpop.xlane.xlu0 %2491 }
0x1683   :  { %v2494_v19 = vsub.f32 %v2486_v2, %v2492_v17  ;;  %v2489_v20 = vpop.xlane.xlu1 %2488 }
0x1684   :  { %v2493_v21 = vsub.f32 %v2485_v52, %v2489_v20 }
0x1685   :  { %v2497_v22 = vmul.f32 1.442695, %v2494_v19 }
0x1686   :  { %v2495_v23 = vmul.f32 1.442695, %v2493_v21  ;;  %v2510_v18 = vpop.permute.xlu0 %2509 }
0x1687   :  { %5016 = vpow2.f32 %v2497_v22  ;;  %v2586_v24 = vpop.permute.xlu1 %2585  ;;  %4728 = vmatpush3.msra.mxu1 %v2510_v18 }
0x1688   :  { %5018 = vpow2.f32 %v2495_v23  ;;  %4733 = vmatpush3.msra.mxu0 %v2586_v24  ;;  %4737 = vmatprep.subr.mxu1 %v5063_v6 }
0x1689   :  { %4742 = vmatprep.subr.mxu0 %v5063_v6 }
0x168b   :  { %v2664_v29 = vpop.permute.xlu1 %2663 }
0x168f   :  { %v2742_v11 = vpop.permute.xlu1 %2741 }
0x1691   :  { %v5017_v25 = vpop.eup %5016 }
0x1692   :  { %v5019_v26 = vpop.eup %5018  ;;  %v2502_v27 = vsel %vm470_vm5, %v5017_v25, 0.0 }
0x1693   :  { %2503 = vadd.xlane.f32.xlu1 %v2502_v27  ;;  %v2499_v28 = vsel %vm470_vm5, %v5019_v26, 0.0 }
0x1694   :  { %2500 = vadd.xlane.f32.xlu0 %v2499_v28 }
0x16a4   :  { %2739 = vrot.lane.b32.xlu1 %v5551_v58, %s5069_s29 }
0x16aa   :  { %2661 = vrot.lane.b32.xlu0 %v5553_v60, %s5069_s29 }
0x1720   :  { %v2504_v31 = vpop.xlane.xlu1 %2503 }
0x1721   :  { %5020 = vrcp.f32 %v2504_v31  ;;  %v2501_v32 = vpop.xlane.xlu0 %2500 }
0x1722   :  { %5022 = vrcp.f32 %v2501_v32 }
0x1724   :  { %v2740_v38 = vpop.permute.xlu1 %2739 }
0x1725   :  { %v2662_v39 = vpop.permute.xlu0 %2661 }
0x172b   :  { %v5021_v33 = vpop.eup %5020 }
0x172c   :  { %v5023_v34 = vpop.eup %5022  ;;  %v2508_v35 = vmul.f32 %v5021_v33, %v5017_v25 }
0x172d   :  { %v2507_v37 = vmul.f32 %v5023_v34, %v5019_v26 }
0x172e   :  { %4735 = vmatmul.mubr.msk.f32.vlgmr.msra.gmra.mrb[26].mxu0 %vm470_vm5, %v2508_v35 }
0x172f   :  { %4743 = vmatpush3.xpose.msk.msra.mxu0 %vm470_vm5, %v2742_v11  ;;  %4730 = vmatmul.mubr.msk.f32.vlgmr.msra.gmra.mrb[24].mxu1 %vm470_vm5, %v2507_v37 }
0x1730   :  { %4738 = vmatpush3.xpose.msk.msra.mxu1 %vm470_vm5, %v2664_v29  ;;  %4744 = vmatprep.mubr.msk.f32.mxu0 %vm5064_vm4, %v5063_v6 }
0x1731   :  { %4739 = vmatprep.mubr.msk.f32.mxu1 %vm5064_vm4, %v5063_v6  ;;  %4752 = vmatprep.subr.mxu0 %v5063_v6 }
0x1732   :  { %4745 = vmatmul.mubr.msk.f32.vlgmr.msra.gmra.mrb[28].mxu0 %vm470_vm5, %v2740_v38  ;;  %4747 = vmatprep.subr.mxu1 %v5063_v6 }
0x1733   :  { %4740 = vmatmul.mubr.msk.f32.vlgmr.msra.gmra.mrb[26].mxu1 %vm470_vm5, %v2662_v39  ;;  %4754 = vmatprep.mubr.msk.f32.mxu0 %vm5064_vm4, %v5063_v6 }
0x1734   :  { %4749 = vmatprep.mubr.msk.f32.mxu1 %vm5064_vm4, %v5063_v6 }
0x1801   :  { %v5607_v40 = vpop.f32.mrb[26].mxu0 }
0x1802   :  { %v5609_v41 = vpop.f32.mrb[24].mxu1  ;;  %v4736_v42 = vpop.f32.mrb[27].mxu0 }
0x1803   :  { %v4731_v44 = vpop.f32.mrb[25].mxu1 }
0x1805   :  { %v2813_v45 = vpop.f32.mrb[28].mxu0 }
0x1806   :  { %v2818_v46 = vmul.f32 0.35355338, %v2813_v45  ;;  %v2735_v47 = vpop.f32.mrb[26].mxu1  ;;  %v4746_v48 = vpop.f32.mrb[29].mxu0 }
0x1807   :  { %v2817_v49 = vmul.f32 0.35355338, %v2735_v47  ;;  %v4741_v50 = vpop.f32.mrb[27].mxu1 }
0x1808   :  { %v2820_v14 = vadd.f32 %v2818_v46, %v5304_v36 }
0x1809   :  { %v2819_v57 = vadd.f32 %v2817_v49, %v5300_v30 }
0x180a   :  { %v2824_v4 = vsel %vm470_vm5, %v2820_v14, -inf }
0x180b   :  { %2825 = vmax.xlane.f32.xlu1 %v2824_v4  ;;  %v2821_v59 = vsel %vm470_vm5, %v2819_v57, -inf }
0x180c   :  { %2822 = vmax.xlane.f32.xlu0 %v2821_v59 }
0x181c   :  { %2919 = vrot.lane.b32.xlu1 %v5551_v58, %s5070_s3 }
0x1820   :  { %2997 = vrot.lane.b32.xlu1 %v5553_v60, %s5071_s30 }
0x1822   :  { %2843 = vrot.lane.b32.xlu0 %v5553_v60, %s5070_s3 }
0x1824   :  { %3075 = vrot.lane.b32.xlu1 %v5551_v58, %s5071_s30 }
0x1828   :  { %3073 = vrot.lane.b32.xlu1 %v5551_v58, %s5072_s5 }
0x1898   :  { %v2826_v61 = vpop.xlane.xlu1 %2825 }
0x1899   :  { %v2828_v62 = vsub.f32 %v2820_v14, %v2826_v61  ;;  %v2823_v63 = vpop.xlane.xlu0 %2822 }
0x189a   :  { %v2827_v0 = vsub.f32 %v2819_v57, %v2823_v63 }
0x189b   :  { %v2831_v1 = vmul.f32 1.442695, %v2828_v62 }
0x189c   :  { %v2829_v15 = vmul.f32 1.442695, %v2827_v0  ;;  %v2920_v5 = vpop.permute.xlu1 %2919 }
0x189d   :  { %5024 = vpow2.f32 %v2831_v1  ;;  %4753 = vmatpush3.msra.mxu0 %v2920_v5  ;;  %v2844_v3 = vpop.permute.xlu0 %2843 }
0x189e   :  { %4748 = vmatpush3.msra.mxu1 %v2844_v3  ;;  %4762 = vmatprep.subr.mxu0 %v5063_v6  ;;  %5026 = vpow2.f32 %v2829_v15 }
0x189f   :  { %4757 = vmatprep.subr.mxu1 %v5063_v6 }
0x18a0   :  { %v2998_v20 = vpop.permute.xlu1 %2997 }
0x18a4   :  { %v3076_v22 = vpop.permute.xlu1 %3075 }
0x18a7   :  { %v5025_v2 = vpop.eup %5024 }
0x18a8   :  { %v2836_v52 = vsel %vm470_vm5, %v5025_v2, 0.0  ;;  %v5027_v12 = vpop.eup %5026  ;;  %v3074_v25 = vpop.permute.xlu1 %3073 }
0x18a9   :  { %2837 = vadd.xlane.f32.xlu0 %v2836_v52  ;;  %v2833_v56 = vsel %vm470_vm5, %v5027_v12, 0.0 }
0x18ad   :  { %2834 = vadd.xlane.f32.xlu0 %v2833_v56 }
0x18c3   :  { %2995 = vrot.lane.b32.xlu0 %v5553_v60, %s5072_s5 }
0x1936   :  { %v2838_v17 = vpop.xlane.xlu0 %2837 }
0x1937   :  { %5028 = vrcp.f32 %v2838_v17 }
0x193a   :  { %v2835_v19 = vpop.xlane.xlu0 %2834 }
0x193b   :  { %5030 = vrcp.f32 %v2835_v19 }
0x193e   :  { %v2996_v26 = vpop.permute.xlu0 %2995 }
0x1941   :  { %v5029_v21 = vpop.eup %5028 }
0x1942   :  { %v2842_v23 = vmul.f32 %v5029_v21, %v5025_v2 }
0x1944   :  { %4755 = vmatmul.mubr.msk.f32.vlgmr.msra.gmra.mrb[30].mxu0 %vm470_vm5, %v2842_v23 }
0x1945   :  { %v5031_v18 = vpop.eup %5030  ;;  %4763 = vmatpush3.xpose.msk.msra.mxu0 %vm470_vm5, %v3076_v22  ;;  %4764 = vmatprep.mubr.msk.f32.mxu0 %vm5064_vm4, %v5063_v6 }
0x1946   :  { %v2841_v24 = vmul.f32 %v5031_v18, %v5027_v12  ;;  %4772 = vmatprep.subr.mxu0 %v5063_v6 }
0x1948   :  { %4750 = vmatmul.mubr.msk.f32.vlgmr.msra.gmra.mrb[28].mxu1 %vm470_vm5, %v2841_v24  ;;  %4765 = vmatmul.mubr.msk.f32.vlgmr.msra.gmra.mrb[32].mxu0 %vm470_vm5, %v3074_v25 }
0x1949   :  { %4758 = vmatpush3.xpose.msk.msra.mxu1 %vm470_vm5, %v2998_v20  ;;  %4759 = vmatprep.mubr.msk.f32.mxu1 %vm5064_vm4, %v5063_v6 }
0x194a   :  { %4767 = vmatprep.subr.mxu1 %v5063_v6  ;;  %4774 = vmatprep.mubr.msk.f32.mxu0 %vm5064_vm4, %v5063_v6 }
0x194c   :  { %4760 = vmatmul.mubr.msk.f32.vlgmr.msra.gmra.mrb[30].mxu1 %vm470_vm5, %v2996_v26 }
0x194d   :  { %4769 = vmatprep.mubr.msk.f32.mxu1 %vm5064_vm4, %v5063_v6 }
0x1a17   :  { %v5647_v27 = vpop.f32.mrb[30].mxu0 }
0x1a18   :  { %v4756_v28 = vpop.f32.mrb[31].mxu0 }
0x1a1b   :  { %v5649_v29 = vpop.f32.mrb[28].mxu1  ;;  %v3147_v11 = vpop.f32.mrb[32].mxu0 }
0x1a1c   :  { %v3152_v31 = vmul.f32 0.35355338, %v3147_v11  ;;  %v4751_v32 = vpop.f32.mrb[29].mxu1  ;;  %v4766_v33 = vpop.f32.mrb[33].mxu0 }
0x1a1e   :  { %v3154_v34 = vadd.f32 %v3152_v31, %v5304_v36 }
0x1a1f   :  { %v3069_v35 = vpop.f32.mrb[30].mxu1 }
0x1a20   :  { %v3151_v37 = vmul.f32 0.35355338, %v3069_v35  ;;  %v4761_v38 = vpop.f32.mrb[31].mxu1  ;;  %v3158_v39 = vsel %vm470_vm5, %v3154_v34, -inf }
0x1a21   :  { %3159 = vmax.xlane.f32.xlu1 %v3158_v39 }
0x1a22   :  { %v3153_v42 = vadd.f32 %v3151_v37, %v5300_v30 }
0x1a24   :  { %v3155_v44 = vsel %vm470_vm5, %v3153_v42, -inf }
0x1a25   :  { %3156 = vmax.xlane.f32.xlu0 %v3155_v44 }
0x1a32   :  { %3253 = vrot.lane.b32.xlu1 %v5551_v58, %s5073_s16 }
0x1a36   :  { %3331 = vrot.lane.b32.xlu1 %v5553_v60, %s5074_s17 }
0x1a3a   :  { %3409 = vrot.lane.b32.xlu1 %v5551_v58, %s5074_s17 }
0x1a3b   :  { %3177 = vrot.lane.b32.xlu0 %v5553_v60, %s5073_s16 }
0x1a3e   :  { %3407 = vrot.lane.b32.xlu1 %v5551_v58, %s5075_s18 }
0x1aae   :  { %v3160_v45 = vpop.xlane.xlu1 %3159 }
0x1aaf   :  { %v3162_v46 = vsub.f32 %v3154_v34, %v3160_v45 }
0x1ab1   :  { %v3165_v47 = vmul.f32 1.442695, %v3162_v46 }
0x1ab2   :  { %v3254_v48 = vpop.permute.xlu1 %3253  ;;  %v3157_v49 = vpop.xlane.xlu0 %3156 }
0x1ab3   :  { %5032 = vpow2.f32 %v3165_v47  ;;  %v3161_v50 = vsub.f32 %v3153_v42, %v3157_v49  ;;  %4773 = vmatpush3.msra.mxu0 %v3254_v48 }
0x1ab4   :  { %4782 = vmatprep.subr.mxu0 %v5063_v6 }
0x1ab5   :  { %v3163_v14 = vmul.f32 1.442695, %v3161_v50  ;;  %v4417_v50 = vld [vmem:[%s5848_s9 + $0x68] sm:$0xff] }
0x1ab6   :  { %v3178_v57 = vpop.permute.xlu0 %3177  ;;  %v3332_v1 = vpop.permute.xlu1 %3331 }
0x1ab7   :  { %5034 = vpow2.f32 %v3163_v14  ;;  %4768 = vmatpush3.msra.mxu1 %v3178_v57  ;;  %v4418_v57 = vld [vmem:[%s5848_s9 + $0x70] sm:$0xff] }
0x1ab8   :  { %4777 = vmatprep.subr.mxu1 %v5063_v6 }
0x1aba   :  { %v3410_v5 = vpop.permute.xlu1 %3409 }
0x1abd   :  { %v5033_v4 = vpop.eup %5032 }
0x1abe   :  { %v3170_v59 = vsel %vm470_vm5, %v5033_v4, 0.0  ;;  %v3408_v12 = vpop.permute.xlu1 %3407 }
0x1abf   :  { %3171 = vadd.xlane.f32.xlu0 %v3170_v59 }
0x1ac1   :  { %v5035_v61 = vpop.eup %5034 }
0x1ac2   :  { %v3167_v62 = vsel %vm470_vm5, %v5035_v61, 0.0 }
0x1ac3   :  { %3168 = vadd.xlane.f32.xlu0 %v3167_v62 }
0x1ad9   :  { %3329 = vrot.lane.b32.xlu0 %v5553_v60, %s5075_s18 }
0x1b4c   :  { %v3172_v63 = vpop.xlane.xlu0 %3171 }
0x1b4d   :  { %5036 = vrcp.f32 %v3172_v63 }
0x1b50   :  { %v3169_v0 = vpop.xlane.xlu0 %3168 }
0x1b51   :  { %5038 = vrcp.f32 %v3169_v0 }
0x1b54   :  { %v3330_v56 = vpop.permute.xlu0 %3329 }
0x1b57   :  { %v5037_v15 = vpop.eup %5036 }
0x1b58   :  { %v3176_v3 = vmul.f32 %v5037_v15, %v5033_v4  ;;  %v4419_v4 = vld [vmem:[%s5848_s9 + $0x78] sm:$0xff] }
0x1b59   :  { %v4907_v59 = vpack.c.bf16 %v4419_v4, %v4418_v57 }
0x1b5a   :  { %4775 = vmatmul.mubr.msk.f32.vlgmr.msra.gmra.mrb[34].mxu0 %vm470_vm5, %v3176_v3 }
0x1b5b   :  { %v5039_v2 = vpop.eup %5038  ;;  %4783 = vmatpush3.xpose.msk.msra.mxu0 %vm470_vm5, %v3410_v5  ;;  %4784 = vmatprep.mubr.msk.f32.mxu0 %vm5064_vm4, %v5063_v6 }
0x1b5c   :  { %v3175_v52 = vmul.f32 %v5039_v2, %v5035_v61  ;;  %4792 = vmatprep.subr.mxu0 %v5063_v6 }
0x1b5e   :  { %4770 = vmatmul.mubr.msk.f32.vlgmr.msra.gmra.mrb[32].mxu1 %vm470_vm5, %v3175_v52  ;;  %4785 = vmatmul.mubr.msk.f32.vlgmr.msra.gmra.mrb[36].mxu0 %vm470_vm5, %v3408_v12 }
0x1b5f   :  { %4778 = vmatpush3.xpose.msk.msra.mxu1 %vm470_vm5, %v3332_v1  ;;  %4779 = vmatprep.mubr.msk.f32.mxu1 %vm5064_vm4, %v5063_v6 }
0x1b60   :  { %4787 = vmatprep.subr.mxu1 %v5063_v6  ;;  %4794 = vmatprep.mubr.msk.f32.mxu0 %vm5064_vm4, %v5063_v6 }
0x1b62   :  { %4780 = vmatmul.mubr.msk.f32.vlgmr.msra.gmra.mrb[34].mxu1 %vm470_vm5, %v3330_v56 }
0x1b63   :  { %4789 = vmatprep.mubr.msk.f32.mxu1 %vm5064_vm4, %v5063_v6 }
0x1c2d   :  { %v3325_v17 = vpop.f32.mrb[34].mxu0 }
0x1c2e   :  { %v4776_v19 = vpop.f32.mrb[35].mxu0 }
0x1c31   :  { %v3249_v20 = vpop.f32.mrb[32].mxu1  ;;  %v3481_v21 = vpop.f32.mrb[36].mxu0 }
0x1c32   :  { %v3486_v22 = vmul.f32 0.35355338, %v3481_v21  ;;  %v4771_v23 = vpop.f32.mrb[33].mxu1  ;;  %v4786_v18 = vpop.f32.mrb[37].mxu0 }
0x1c34   :  { %v3488_v24 = vadd.f32 %v3486_v22, %v5304_v36 }
0x1c35   :  { %v3403_v25 = vpop.f32.mrb[34].mxu1 }
0x1c36   :  { %v3485_v26 = vmul.f32 0.35355338, %v3403_v25  ;;  %v4781_v28 = vpop.f32.mrb[35].mxu1  ;;  %v3492_v11 = vsel %vm470_vm5, %v3488_v24, -inf }
0x1c37   :  { %3493 = vmax.xlane.f32.xlu1 %v3492_v11 }
0x1c38   :  { %v3487_v31 = vadd.f32 %v3485_v26, %v5300_v30 }
0x1c3a   :  { %v3489_v32 = vsel %vm470_vm5, %v3487_v31, -inf }
0x1c3b   :  { %3490 = vmax.xlane.f32.xlu0 %v3489_v32 }
0x1c48   :  { %3587 = vrot.lane.b32.xlu1 %v5551_v58, %s5076_s6 }
0x1c4c   :  { %3665 = vrot.lane.b32.xlu1 %v5649_v29, %s5077_s7 }
0x1c50   :  { %3667 = vrot.lane.b32.xlu1 %v5647_v27, %s5077_s7 }
0x1c54   :  { %3675 = vrot.lane.b32.xlu1 %v3325_v17, %s5062_s0 }
0x1cc4   :  { %v3494_v36 = vpop.xlane.xlu1 %3493 }
0x1cc5   :  { %v3496_v33 = vsub.f32 %v3488_v24, %v3494_v36 }
0x1cc7   :  { %v3499_v34 = vmul.f32 1.442695, %v3496_v33 }
0x1cc8   :  { %v3588_v35 = vpop.permute.xlu1 %3587  ;;  %v3491_v37 = vpop.xlane.xlu0 %3490 }
0x1cc9   :  { %5040 = vpow2.f32 %v3499_v34  ;;  %v3495_v30 = vsub.f32 %v3487_v31, %v3491_v37  ;;  %4793 = vmatpush3.msra.mxu0 %v3588_v35 }
0x1ccb   :  { %v3497_v38 = vmul.f32 1.442695, %v3495_v30 }
0x1ccc   :  { %v3666_v1 = vpop.permute.xlu1 %3665 }
0x1ccd   :  { %5042 = vpow2.f32 %v3497_v38  ;;  %v3687_v2 = vsel %vm470_vm5, %v5609_v41, %v3666_v1  ;;  %v5732_v41 = vld [vmem:[%s5849_s11 + $0x8] sm:$0xff]  ;;  %v4428_v1 = vld [vmem:[%s5848_s9 + $0xa0] sm:$0xff] }
0x1cce   :  { %v3820_v57 = vrot.slane %v5732_v41, %v5227_v16 }
0x1cd0   :  { %v3668_v15 = vpop.permute.xlu1 %3667 }
0x1cd1   :  { %v3688_v12 = vsel %vm470_vm5, %v5607_v40, %v3668_v15  ;;  %v3701_v40 = vrot.slane %v5732_v41, %v5197_v13  ;;  %v4429_v15 = vld [vmem:[%s5848_s9 + $0xa8] sm:$0xff] }
0x1cd3   :  { %v5041_v39 = vpop.eup %5040 }
0x1cd4   :  { %v3504_v58 = vsel %vm470_vm5, %v5041_v39, 0.0  ;;  %v3676_v5 = vpop.permute.xlu1 %3675 }
0x1cd5   :  { %3505 = vadd.xlane.f32.xlu0 %v3504_v58  ;;  %v3690_v19 = vsel %vm59_vm2, %v3688_v12, %v3676_v5  ;;  %v4430_v5 = vld [vmem:[%s5848_s9 + $0xb0] sm:$0xff]  ;;  %v3831_v12 = vrot.slane %v5732_v41, %v5187_v10 }
0x1cd7   :  { %v5043_v29 = vpop.eup %5042 }
0x1cd8   :  { %v3501_v42 = vsel %vm470_vm5, %v5043_v29, 0.0 }
0x1cd9   :  { %3502 = vadd.xlane.f32.xlu0 %v3501_v42  ;;  %v4425_v42 = vld [vmem:[%s5848_s9 + $0x98] sm:$0xff] }
0x1cef   :  { %3511 = vrot.lane.b32.xlu0 %v5553_v60, %s5076_s6  ;;  %v4416_v60 = vld [vmem:[%s5848_s9 + $0x60] sm:$0xff] }
0x1cf0   :  { %v4903_v14 = vpack.c.bf16 %v4417_v50, %v4416_v60  ;;  %v3814_v60 = vrot.slane %v5732_v41, %v5222_v7 }
0x1cf3   :  { %3673 = vrot.lane.b32.xlu0 %v3249_v20, %s5062_s0 }
0x1d62   :  { %v3506_v27 = vpop.xlane.xlu0 %3505 }
0x1d63   :  { %5044 = vrcp.f32 %v3506_v27 }
0x1d66   :  { %v3503_v44 = vpop.xlane.xlu0 %3502 }
0x1d67   :  { %5046 = vrcp.f32 %v3503_v44 }
0x1d6a   :  { %v3512_v45 = vpop.permute.xlu0 %3511 }
0x1d6b   :  { %4788 = vmatpush3.msra.mxu1 %v3512_v45 }
0x1d6c   :  { %4904 = vmatprep.subr.bf16.mxu1 %v4903_v14 }
0x1d6d   :  { %v5045_v46 = vpop.eup %5044 }
0x1d6e   :  { %v3510_v47 = vmul.f32 %v5045_v46, %v5041_v39  ;;  %v3674_v3 = vpop.permute.xlu0 %3673  ;;  %v4423_v39 = vld [vmem:[%s5848_s9 + $0x88] sm:$0xff] }
0x1d6f   :  { %v3689_v56 = vsel %vm59_vm2, %v3687_v2, %v3674_v3  ;;  %v4919_v3 = vpack.c.bf16 %v4429_v15, %v4428_v1  ;;  %v4431_v2 = vld [vmem:[%s5848_s9 + $0xb8] sm:$0xff]  ;;  %v4052_v15 = vrot.slane %v5732_v41, %v5213_v54  ;;  %v4144_v54 = vld [vmem:[%s5850_s12] sm:$0xff] }
0x1d70   :  { %4795 = vmatmul.mubr.msk.f32.vlgmr.msra.gmra.mrb[38].mxu0 %vm470_vm5, %v3510_v47 }
0x1d71   :  { %v5047_v48 = vpop.eup %5046 }
0x1d72   :  { %v3509_v49 = vmul.f32 %v5047_v48, %v5043_v29  ;;  %v4424_v29 = vld [vmem:[%s5848_s9 + $0x90] sm:$0xff] }
0x1d73   :  { %v4915_v27 = vpack.c.bf16 %v4425_v42, %v4424_v29 }
0x1d74   :  { %4790 = vmatmul.mubr.msk.f32.vlgmr.msra.gmra.mrb[36].mxu1 %vm470_vm5, %v3509_v49 }
0x1d75   :  { %4906 = vmatpush3.bf16.msra.mxu1 %v4903_v14 }
0x1d76   :  { %4908 = vmatprep.subr.bf16.mxu1 %v4907_v59 }
0x1d79   :  { %4910 = vmatpush3.bf16.msra.mxu1 %v4907_v59 }
0x1d7a   :  { %4920 = vmatprep.subr.bf16.mxu1 %v4919_v3 }
0x1e43   :  { %v3659_v61 = vpop.f32.mrb[38].mxu0 }
0x1e44   :  { %3683 = vrot.lane.b32.xlu1 %v3659_v61, %s5078_s28  ;;  %v4796_v62 = vpop.f32.mrb[39].mxu0 }
0x1e47   :  { %v3583_v63 = vpop.f32.mrb[36].mxu1 }
0x1e48   :  { %3681 = vrot.lane.b32.xlu0 %v3583_v63, %s5078_s28  ;;  %v4791_v0 = vpop.f32.mrb[37].mxu1 }
0x1eb6   :  { %v3684_v52 = vpop.permute.xlu1 %3683 }
0x1eb7   :  { %v3692_v21 = vsel %vm1863_vm6, %v3690_v19, %v3684_v52  ;;  %v4923_v52 = vpack.c.bf16 %v4431_v2, %v4430_v5  ;;  %v4065_v5 = vmul.u32 8, %v5184_v9 }
0x1eba   :  { %v3682_v17 = vpop.permute.xlu0 %3681 }
0x1ebb   :  { %v3691_v20 = vsel %vm1863_vm6, %v3689_v56, %v3682_v17 }
0x1ebc   :  { %4805 = vmatprep.mubr.msk.f32.mxu1 %vm331_vm3, %v3691_v20 }
0x1ebd   :  { %4806 = vmatmul.mubr.msk.f32.vlgmr.msra.gmra.mrb[38].mxu1 %vm331_vm3, %v3692_v21 }
0x1ebe   :  { %4922 = vmatpush3.bf16.msra.mxu1 %v4919_v3 }
0x1ebf   :  { %4924 = vmatprep.subr.bf16.mxu1 %v4923_v52 }
0x1ec2   :  { %4926 = vmatpush3.bf16.msra.mxu1 %v4923_v52 }
0x1f90   :  { %v4807_v22 = vpop.f32.mrb[38].mxu1 }
0x1f91   :  { %v3780_v23 = vadd.f32 %v4807_v22, %v3701_v40  ;;  %v3774_v18 = vpop.f32.mrb[39].mxu1 }
0x1f92   :  { %v3775_v24 = vadd.f32 %v3774_v18, %v3701_v40 }
0x1f93   :  { %v3784_v25 = vadd.f32 %v3780_v23, %v5540_v55 }
0x1f94   :  { %v3783_v26 = vadd.f32 %v3775_v24, %v5538_v51  ;;  %v4422_v51 = vld [vmem:[%s5848_s9 + $0x80] sm:$0xff] }
0x1f95   :  { %v3788_v28 = vsel %vm331_vm3, %v3784_v25, 0.0  ;;  %v4911_v58 = vpack.c.bf16 %v4423_v39, %v4422_v51 }
0x1f96   :  { %3789 = vadd.xlane.f32.xlu1 %v3788_v28  ;;  %v3785_v11 = vsel %vm331_vm3, %v3783_v26, 0.0 }
0x1f97   :  { %3786 = vadd.xlane.f32.xlu0 %v3785_v11  ;;  %4912 = vmatprep.subr.bf16.mxu0 %v4911_v58 }
0x1f98   :  { %4914 = vmatpush3.bf16.msra.mxu0 %v4911_v58 }
0x1f99   :  { %4916 = vmatprep.subr.bf16.mxu0 %v4915_v27 }
0x1f9c   :  { %4918 = vmatpush3.bf16.msra.mxu0 %v4915_v27 }
0x2023   :  { %v3790_v31 = vpop.xlane.xlu1 %3789 }
0x2024   :  { %v3792_v32 = vmul.f32 0.03125, %v3790_v31  ;;  %v3787_v36 = vpop.xlane.xlu0 %3786 }
0x2025   :  { %v3791_v33 = vmul.f32 0.03125, %v3787_v36 }
0x2026   :  { %v3794_v34 = vsub.f32 %v3784_v25, %v3792_v32 }
0x2027   :  { %v3793_v35 = vsub.f32 %v3783_v26, %v3791_v33 }
0x2028   :  { %v3796_v38 = vmul.f32 %v3794_v34, %v3794_v34 }
0x2029   :  { %v3795_v37 = vmul.f32 %v3793_v35, %v3793_v35 }
0x202a   :  { %v3800_v55 = vsel %vm331_vm3, %v3796_v38, 0.0  ;;  %v3939_v38 = vrot.slane %v5732_v41, %v5210_v53 }
0x202b   :  { %v3797_v30 = vsel %vm331_vm3, %v3795_v37, 0.0 }
0x202c   :  { %3798 = vadd.xlane.f32.xlu0 %v3797_v30 }
0x2030   :  { %3801 = vadd.xlane.f32.xlu0 %v3800_v55 }
0x20b9   :  { %v3799_v44 = vpop.xlane.xlu0 %3798 }
0x20ba   :  { %v3803_v45 = vmul.f32 0.03125, %v3799_v44 }
0x20bc   :  { %v3805_v46 = vadd.f32 1e-12, %v3803_v45 }
0x20bd   :  { %v3802_v47 = vpop.xlane.xlu0 %3801 }
0x20be   :  { %5048 = vrsqrt.f32 %v3805_v46  ;;  %v3804_v48 = vmul.f32 0.03125, %v3802_v47 }
0x20c0   :  { %v3806_v49 = vadd.f32 1e-12, %v3804_v48 }
0x20c2   :  { %5050 = vrsqrt.f32 %v3806_v49 }
0x20c8   :  { %v5049_v50 = vpop.eup %5048 }
0x20c9   :  { %v3809_v14 = vmul.f32 %v5049_v50, %v3793_v35 }
0x20cb   :  { %v3815_v4 = vmul.f32 %v3814_v60, %v3809_v14 }
0x20cc   :  { %v5051_v59 = vpop.eup %5050 }
0x20cd   :  { %v3810_v61 = vmul.f32 %v5051_v59, %v3794_v34  ;;  %v3821_v62 = vadd.f32 %v3820_v57, %v3815_v4  ;;  %v5079_v4 = vmov 0.0|0.0  }
0x20ce   :  { %4927 = vmatprep.subr.bf16.mxu0 %v5079_v4  ;;  %4936 = vmatprep.subr.bf16.mxu1 %v5079_v4 }
0x20cf   :  { %v3816_v63 = vmul.f32 %v3814_v60, %v3810_v61  ;;  %4816 = vmatprep.mubr.msk.f32.mxu0 %vm331_vm3, %v3821_v62 }
0x20d1   :  { %v3822_v0 = vadd.f32 %v3820_v57, %v3816_v63 }
0x20d3   :  { %4817 = vmatmul.mubr.msk.f32.vlgmr.msra.gmra.mrb[40].mxu0 %vm331_vm3, %v3822_v0 }
0x20d4   :  { %4834 = vmatprep.mubr.msk.f32.mxu0 %vm5064_vm4, %v5063_v6 }
0x21a6   :  { %v4818_v56 = vpop.f32.mrb[40].mxu0 }
0x21a7   :  { %v3910_v17 = vadd.f32 %v4818_v56, %v3831_v12  ;;  %v3904_v19 = vpop.f32.mrb[41].mxu0 }
0x21a8   :  { %v3905_v20 = vadd.f32 %v3904_v19, %v3831_v12  ;;  %v4058_v12 = vrot.slane %v5732_v41, %v2229_v43  ;;  %v4062_v19 = vand.u32 127, %v55_v8  ;;  %v4146_v8 = vld [vmem:[%s5850_s12 + $0x10] sm:$0xff] }
0x21a9   :  { %v3916_v21 = vmul.f32 0.044715, %v3910_v17  ;;  %v3914_v35 = vmul.f32 0.5, %v3910_v17 }
0x21aa   :  { %v3915_v40 = vmul.f32 0.044715, %v3905_v20  ;;  %v3913_v33 = vmul.f32 0.5, %v3905_v20 }
0x21ab   :  { %v3918_v22 = vmul.f32 %v3916_v21, %v3910_v17 }
0x21ac   :  { %v3917_v23 = vmul.f32 %v3915_v40, %v3905_v20 }
0x21ad   :  { %v3920_v18 = vmul.f32 %v3918_v22, %v3910_v17 }
0x21ae   :  { %v3919_v24 = vmul.f32 %v3917_v23, %v3905_v20  ;;  %v4145_v23 = vld [vmem:[%s5850_s12 + $0x8] sm:$0xff] }
0x21af   :  { %v3922_v25 = vadd.f32 %v3920_v18, %v3910_v17  ;;  %v4931_v41 = vpack.c.bf16 %v4145_v23, %v4144_v54  ;;  %v4147_v18 = vld [vmem:[%s5850_s12 + $0x18] sm:$0xff] }
0x21b0   :  { %v3921_v26 = vadd.f32 %v3919_v24, %v3905_v20  ;;  %v4066_v20 = vadd.s32 7, %v4065_v5  ;;  %v4934_v24 = vpack.c.bf16 %v4147_v18, %v4146_v8 }
0x21b1   :  { %v3924_v28 = vmul.f32 0.7978846, %v3922_v25 }
0x21b2   :  { %v3923_v11 = vmul.f32 0.7978846, %v3921_v26  ;;  %vm4067_vm7 = vcmp.eq.s32.totalorder %v4062_v19, %v4066_v20 }
0x21b3   :  { %5052 = vtanh.f32 %v3924_v28  ;;  %v4434_v43 = vsel %vm4067_vm7, 1.0, %v5063_v6  ;;  %v4143_v28 = vld [vmem:[%s5851_s14] sm:$0xf] }
0x21b4   :  { %5054 = vtanh.f32 %v3923_v11  ;;  %v4151_v11 = vrot.slane %v4143_v28, %v5197_v13  ;;  %v4251_v13 = vld [vmem:[%s5852_s13 + $0x8] sm:$0xff] }
0x21bd   :  { %v5053_v31 = vpop.eup %5052 }
0x21be   :  { %v5055_v32 = vpop.eup %5054  ;;  %v3928_v36 = vadd.f32 1.0, %v5053_v31 }
0x21bf   :  { %v3927_v34 = vadd.f32 1.0, %v5055_v32 }
0x21c0   :  { %v3930_v30 = vmul.f32 %v3928_v36, %v3914_v35 }
0x21c1   :  { %v3929_v37 = vmul.f32 %v3927_v34, %v3913_v33 }
0x21c3   :  { %4827 = vmatprep.mubr.msk.f32.mxu1 %vm331_vm3, %v3929_v37 }
0x21c4   :  { %4828 = vmatmul.mubr.msk.f32.vlgmr.msra.gmra.mrb[40].mxu1 %vm331_vm3, %v3930_v30 }
0x21c5   :  { %4856 = vmatprep.mubr.msk.f32.mxu1 %vm5064_vm4, %v5063_v6 }
0x2297   :  { %v4829_v55 = vpop.f32.mrb[40].mxu1 }
0x2298   :  { %v4018_v51 = vadd.f32 %v4829_v55, %v3939_v38  ;;  %v4012_v39 = vpop.f32.mrb[41].mxu1 }
0x2299   :  { %v4013_v58 = vadd.f32 %v4012_v39, %v3939_v38  ;;  %v4250_v38 = vld [vmem:[%s5852_s13] sm:$0xff]  ;;  %v4253_v39 = vld [vmem:[%s5852_s13 + $0x18] sm:$0xff] }
0x229a   :  { %v4022_v29 = vadd.f32 %v4018_v51, %v3822_v0  ;;  %v4937_v55 = vpack.c.bf16 %v4251_v13, %v4250_v38  ;;  %v4252_v51 = vld [vmem:[%s5852_s13 + $0x10] sm:$0xff] }
0x229b   :  { %v4021_v42 = vadd.f32 %v4013_v58, %v3821_v62  ;;  %v4940_v58 = vpack.c.bf16 %v4253_v39, %v4252_v51 }
0x229c   :  { %v4026_v27 = vsel %vm331_vm3, %v4022_v29, 0.0  ;;  %4938 = vmatpush3.bf16.msra.mxu1 %v4937_v55 }
0x229d   :  { %4027 = vadd.xlane.f32.xlu1 %v4026_v27  ;;  %v4023_v44 = vsel %vm331_vm3, %v4021_v42, 0.0  ;;  %4939 = vmatprep.subr.bf16.mxu1 %v5079_v4 }
0x229e   :  { %4024 = vadd.xlane.f32.xlu0 %v4023_v44  ;;  %v4242_v44 = vrot.slane %v4143_v28, %v5222_v7 }
0x22a0   :  { %4941 = vmatpush3.bf16.msra.mxu1 %v4940_v58 }
0x232a   :  { %v4028_v45 = vpop.xlane.xlu1 %4027 }
0x232b   :  { %v4030_v46 = vmul.f32 0.03125, %v4028_v45  ;;  %v4025_v47 = vpop.xlane.xlu0 %4024 }
0x232c   :  { %v4029_v48 = vmul.f32 0.03125, %v4025_v47 }
0x232d   :  { %v4032_v49 = vsub.f32 %v4022_v29, %v4030_v46  ;;  %v4247_v46 = vrot.slane %v4143_v28, %v5227_v16 }
0x232e   :  { %v4031_v60 = vsub.f32 %v4021_v42, %v4029_v48 }
0x232f   :  { %v4034_v50 = vmul.f32 %v4032_v49, %v4032_v49 }
0x2330   :  { %v4033_v53 = vmul.f32 %v4031_v60, %v4031_v60 }
0x2331   :  { %v4038_v14 = vsel %vm331_vm3, %v4034_v50, 0.0  ;;  %v4257_v50 = vrot.slane %v4143_v28, %v5187_v10 }
0x2332   :  { %4039 = vadd.xlane.f32.xlu1 %v4038_v14  ;;  %v4035_v57 = vsel %vm331_vm3, %v4033_v53, 0.0 }
0x2333   :  { %4036 = vadd.xlane.f32.xlu0 %v4035_v57 }
0x23bf   :  { %v4040_v59 = vpop.xlane.xlu1 %4039 }
0x23c0   :  { %v4042_v61 = vmul.f32 0.03125, %v4040_v59  ;;  %v4037_v62 = vpop.xlane.xlu0 %4036 }
0x23c1   :  { %v4041_v63 = vmul.f32 0.03125, %v4037_v62 }
0x23c2   :  { %v4044_v0 = vadd.f32 1e-12, %v4042_v61 }
0x23c3   :  { %v4043_v1 = vadd.f32 1e-12, %v4041_v63 }
0x23c4   :  { %5056 = vrsqrt.f32 %v4044_v0 }
0x23c5   :  { %5058 = vrsqrt.f32 %v4043_v1 }
0x23ce   :  { %v5057_v3 = vpop.eup %5056 }
0x23cf   :  { %v5059_v2 = vpop.eup %5058  ;;  %v4048_v52 = vmul.f32 %v5057_v3, %v4032_v49 }
0x23d0   :  { %v4047_v56 = vmul.f32 %v5059_v2, %v4031_v60 }
0x23d1   :  { %v4054_v17 = vmul.f32 %v4052_v15, %v4048_v52 }
0x23d2   :  { %v4053_v21 = vmul.f32 %v4052_v15, %v4047_v56 }
0x23d3   :  { %v4060_v40 = vadd.f32 %v4058_v12, %v4054_v17 }
0x23d4   :  { %v4059_v22 = vadd.f32 %v4058_v12, %v4053_v21 }
0x23d6   :  { %v4928_v9 = vpack.c.bf16 %v4060_v40, %v4059_v22 }
0x23d8   :  { %4929 = vmatpush3.bf16.msra.mxu0 %v4928_v9 }
0x23d9   :  { %4930 = vmatprep.subr.bf16.mxu0 %v5079_v4 }
0x23db   :  { %4835 = vmatmul.mubr.msk.f32.vlgmr.msra.gmra.mrb[42].mxu0 %vm59_vm2, %v4434_v43 }
0x23dc   :  { %4932 = vmatpush3.bf16.msra.mxu0 %v4931_v41  ;;  %4845 = vmatprep.mubr.msk.f32.mxu0 %vm5064_vm4, %v5063_v6 }
0x23dd   :  { %4933 = vmatprep.subr.bf16.mxu0 %v5079_v4 }
0x23e0   :  { %4935 = vmatpush3.bf16.msra.mxu0 %v4934_v24 }
0x24ae   :  { %v4139_v25 = vpop.f32.mrb[42].mxu0 }
0x24af   :  { %v4836_v26 = vpop.f32.mrb[43].mxu0  ;;  %4846 = vmatmul.mubr.msk.f32.vlgmr.msra.gmra.mrb[44].mxu0 %vm331_vm3, %v4139_v25 }
0x2582   :  { %v4221_v31 = vpop.f32.mrb[44].mxu0 }
0x2583   :  { %v4222_v32 = vadd.f32 %v4221_v31, %v4151_v11  ;;  %v4847_v36 = vpop.f32.mrb[45].mxu0 }
0x2585   :  { %v4226_v33 = vsel %vm4225_vm8, %v4222_v32, 0.0 }
0x2586   :  { %4227 = vadd.xlane.f32.xlu0 %v4226_v33 }
0x2613   :  { %v4228_v6 = vpop.xlane.xlu0 %4227 }
0x2614   :  { %v4229_v34 = vmul.f32 0.03125, %v4228_v6 }
0x2616   :  { %v4230_v35 = vsub.f32 %v4222_v32, %v4229_v34 }
0x2618   :  { %v4231_v37 = vmul.f32 %v4230_v35, %v4230_v35 }
0x261a   :  { %v4232_v30 = vsel %vm4225_vm8, %v4231_v37, 0.0 }
0x261b   :  { %4233 = vadd.xlane.f32.xlu1 %v4232_v30 }
0x26a8   :  { %v4234_v29 = vpop.xlane.xlu1 %4233 }
0x26a9   :  { %v4235_v42 = vmul.f32 0.03125, %v4234_v29 }
0x26ab   :  { %v4236_v27 = vadd.f32 1e-12, %v4235_v42 }
0x26ad   :  { %5060 = vrsqrt.f32 %v4236_v27 }
0x26b7   :  { %v5061_v45 = vpop.eup %5060 }
0x26b8   :  { %v4238_v47 = vmul.f32 %v5061_v45, %v4230_v35 }
0x26ba   :  { %v4243_v48 = vmul.f32 %v4242_v44, %v4238_v47 }
0x26bc   :  { %v4248_v49 = vadd.f32 %v4247_v46, %v4243_v48 }
0x26be   :  { %v4249_v60 = vmax.f32 %v4248_v49, 0.0 }
0x26c0   :  { %4857 = vmatmul.mubr.msk.f32.vlgmr.msra.gmra.mrb[42].mxu1 %vm331_vm3, %v4249_v60 }
0x2793   :  { %v4327_v53 = vpop.f32.mrb[42].mxu1 }
0x2794   :  { %v4328_v14 = vadd.f32 %v4327_v53, %v4257_v50  ;;  %v4858_v57 = vpop.f32.mrb[43].mxu1 }
0x2796   :  { %4332 = vst.msk [vmem:[%s5853_s15] sm:$0x3] %vm4331_vm9, %v4328_v14 }

</bundles_post_ra>
